<compile_context>
chip_gen: v6e
topology: v6e:2x2x1
jax: 0.10.0
libtpu: 0.0.40
codegen_flags: <defaults>
</compile_context>

<pallas_src>
import functools
import math

import jax
import jax.numpy as jnp
from jax import lax
from jax.experimental import pallas as pl
from jax.experimental.pallas import tpu as pltpu


# ---------------------------------------------------------------------------
# Fused bidirectional GRU layer.
# Grid = (direction, time_chunk); direction is "parallel" (usable by the 2nd TC on
# v7x), time_chunk is the sequential recurrence ("arbitrary").  The hidden state is
# carried in a per-core VMEM scratch and reset at chunk 0 of each direction.
# ---------------------------------------------------------------------------
def _bigru_kernel(gi_ref, whh_ref, bhh_n_ref, out_ref, h_ref, *, tc):
    """One (direction, time-chunk) grid step.

    gi_ref   : (tc, 3, B, H) bf16  precomputed x@W_ih^T + b_ih (+ b_hh for r,z)
    whh_ref  : (3, H, H)     bf16  per-gate recurrent weights (pre-transposed)
    bhh_n_ref: (1, H)        f32   recurrent bias of the n gate
    out_ref  : (tc, B, H)    bf16  hidden states for this chunk (PyTorch time order)
    h_ref    : (B, H)        f32   carried hidden state (scratch)
    """
    d = pl.program_id(0)                    # 0 = forward, 1 = backward

    @pl.when(pl.program_id(1) == 0)
    def _():
        h_ref[...] = jnp.zeros_like(h_ref)  # PyTorch default h0 = 0

    # Hoist the constant (H,H) gate weights / bias out of the timestep loop.
    w_r = whh_ref[0]
    w_z = whh_ref[1]
    w_n = whh_ref[2]
    b_n = bhh_n_ref[...]                    # (1, H) f32

    def step(i, _):
        # forward walks the chunk 0..tc-1, backward walks it tc-1..0
        row = jnp.where(d == 0, i, tc - 1 - i)
        gi = gi_ref[row].astype(jnp.float32)     # (3, B, H)
        h = h_ref[...]                            # (B, H) f32
        hb = h.astype(jnp.bfloat16)
        gh_r = jnp.dot(hb, w_r, preferred_element_type=jnp.float32)
        gh_z = jnp.dot(hb, w_z, preferred_element_type=jnp.float32)
        gh_n = jnp.dot(hb, w_n, preferred_element_type=jnp.float32)
        r = jax.nn.sigmoid(gi[0] + gh_r)
        z = jax.nn.sigmoid(gi[1] + gh_z)
        n = jnp.tanh(gi[2] + r * (gh_n + b_n))
        h_new = (1.0 - z) * n + z * h
        h_ref[...] = h_new
        out_ref[row] = h_new.astype(out_ref.dtype)
        return None

    lax.fori_loop(0, tc, step, None, unroll=True)


def bigru_layer(gi, whh, bhh_n, *, tc):
    """gi: (2,T,3,B,H) bf16; whh: (2,3,H,H) bf16; bhh_n: (2,1,H) f32.
    Returns direction-stacked hidden states (2,T,B,H) bf16 in PyTorch time order."""
    _, T, _, B, H = gi.shape
    assert T % tc == 0
    nc = T // tc
    kernel = functools.partial(_bigru_kernel, tc=tc)

    def tmap(d, c):
        # forward (d=0): chunk c; backward (d=1): chunk nc-1-c (reverse time order)
        return c + d * (nc - 1 - 2 * c)

    return pl.pallas_call(
        kernel,
        out_shape=jax.ShapeDtypeStruct((2, T, B, H), jnp.bfloat16),
        grid_spec=pltpu.PrefetchScalarGridSpec(
            num_scalar_prefetch=0,
            grid=(2, nc),
            in_specs=[
                pl.BlockSpec((None, tc, 3, B, H),
                             lambda d, c: (d, tmap(d, c), 0, 0, 0)),     # gi chunk
                pl.BlockSpec((None, 3, H, H), lambda d, c: (d, 0, 0, 0)),  # W_hh
                pl.BlockSpec((None, 1, H), lambda d, c: (d, 0, 0)),        # b_hh (n)
            ],
            out_specs=pl.BlockSpec((None, tc, B, H),
                                   lambda d, c: (d, tmap(d, c), 0, 0)),
            scratch_shapes=[pltpu.VMEM((B, H), jnp.float32)],
        ),
        compiler_params=pltpu.CompilerParams(
            # direction axis can be sharded over TensorCores (v7x); time axis is the
            # sequential recurrence.
            dimension_semantics=("parallel", "arbitrary")),
    )(gi, whh, bhh_n)


# ---------------------------------------------------------------------------
# Classifier: ReLU -> Linear, fused in a single small kernel (bf16 matmul, f32 acc).
# ---------------------------------------------------------------------------
def _classifier_kernel(x_ref, w_ref, b_ref, o_ref):
    h = jnp.maximum(x_ref[...].astype(jnp.float32), 0.0)
    o_ref[...] = jnp.dot(h.astype(jnp.bfloat16), w_ref[...],
                         preferred_element_type=jnp.float32) + b_ref[...]


def classifier(x, w_t, b):
    B = x.shape[0]
    C = w_t.shape[1]
    return pl.pallas_call(
        _classifier_kernel,
        out_shape=jax.ShapeDtypeStruct((B, C), jnp.float32),
        in_specs=[pl.BlockSpec(memory_space=pltpu.MemorySpace.VMEM)] * 3,
        out_specs=pl.BlockSpec(memory_space=pltpu.MemorySpace.VMEM),
    )(x, w_t, b)


# ---------------------------------------------------------------------------
# Parameters (PyTorch-style uniform init), pre-transformed for the kernels:
#   wih   : layer 0 -> (2, Din, 3H); layers>0 -> (2, 2, H, 3H)   (bf16)
#   whh   : (2, 3, H, H) per-gate, pre-transposed                 (bf16)
#   b_comb: (2, 3H) = b_ih + [b_hh_r, b_hh_z, 0]  (folded into gi) (f32)
#   bhh_n : (2, 1, H) recurrent bias of the n gate                 (f32)
# ---------------------------------------------------------------------------
def init_params(key, in_dim, hidden_dim, n_layer, n_classes):
    H = hidden_dim
    params = {"gru": []}
    k = 1.0 / math.sqrt(H)
    for layer in range(n_layer):
        d_in = in_dim if layer == 0 else 2 * H
        wih_l, whh_l, bcomb_l, bhhn_l = [], [], [], []
        for _ in range(2):                      # forward, backward
            key, k1, k2, k3, k4 = jax.random.split(key, 5)
            w_ih = jax.random.uniform(k1, (3 * H, d_in), jnp.float32, -k, k)
            w_hh = jax.random.uniform(k2, (3 * H, H), jnp.float32, -k, k)
            b_ih = jax.random.uniform(k3, (3 * H,), jnp.float32, -k, k)
            b_hh = jax.random.uniform(k4, (3 * H,), jnp.float32, -k, k)
            wih_l.append(w_ih.T)                                        # (d_in, 3H)
            whh_l.append(jnp.stack([w_hh[g * H:(g + 1) * H, :].T for g in range(3)]))
            bcomb_l.append(b_ih + jnp.concatenate(
                [b_hh[:2 * H], jnp.zeros((H,), jnp.float32)]))
            bhhn_l.append(b_hh[2 * H:].reshape(1, H))
        wih = jnp.stack(wih_l)                                          # (2, d_in, 3H)
        if layer > 0:
            wih = wih.reshape(2, 2, H, 3 * H)   # (out dir, in dir half, H, 3H)
        params["gru"].append({
            "wih": wih.astype(jnp.bfloat16),
            "whh": jnp.stack(whh_l).astype(jnp.bfloat16),               # (2, 3, H, H)
            "b_comb": jnp.stack(bcomb_l),                               # (2, 3H)
            "bhh_n": jnp.stack(bhhn_l),                                 # (2, 1, H)
        })

    key, k1, k2 = jax.random.split(key, 3)
    kf = 1.0 / math.sqrt(2 * H)
    fc_w = jax.random.uniform(k1, (n_classes, 2 * H), jnp.float32, -kf, kf)
    fc_b = jax.random.uniform(k2, (n_classes,), jnp.float32, -kf, kf)
    params["fc_w_t"] = fc_w.T.astype(jnp.bfloat16)                      # (2H, C)
    params["fc_b"] = fc_b.reshape(1, -1)                                # (1, C)
    return params


# ---------------------------------------------------------------------------
# Full forward: out, _ = BiGRU(x); out = out[:, -1, :]; out = Linear(ReLU(out))
# ---------------------------------------------------------------------------
def _pick_time_chunk(T, max_chunk=8):
    for tc in range(min(T, max_chunk), 0, -1):
        if T % tc == 0:
            return tc
    return 1


def gru_seq_forward(x_btd, params, hidden_dim, n_layer):
    """x_btd: (B, T, in_dim), batch-first like the PyTorch module."""
    H = hidden_dim
    x = jnp.transpose(x_btd, (1, 0, 2)).astype(jnp.float32)   # (T, B, Din)
    T, B, _ = x.shape
    tc = _pick_time_chunk(T)

    prev = None                                               # (2, T, B, H) bf16
    for layer in range(n_layer):
        p = params["gru"][layer]
        # ---- input projection hoisted out of the recurrence (one GEMM, both dirs) ----
        if layer == 0:
            gi = jnp.einsum("tbd,edg->etbg", x.astype(jnp.bfloat16), p["wih"],
                            preferred_element_type=jnp.float32)          # (2,T,B,3H)
        else:
            # Consumes the direction-stacked previous output directly: the (T,B,2H)
            # concat is never materialized.
            gi = jnp.einsum("ftbh,efhg->etbg", prev, p["wih"],
                            preferred_element_type=jnp.float32)          # (2,T,B,3H)
        gi = gi + p["b_comb"][:, None, None, :]
        gi = gi.reshape(2, T, B, 3, H).transpose(0, 1, 3, 2, 4)          # (2,T,3,B,H)
        prev = bigru_layer(gi.astype(jnp.bfloat16), p["whh"], p["bhh_n"], tc=tc)
        # TODO(synk): inter-layer dropout is a train-time-only stochastic op;
        # eval-mode semantics (identity) are implemented here.

    # out[:, -1, :] == concat(h_fwd at t=T-1, h_bwd at t=T-1)
    last = jnp.concatenate([prev[0, -1], prev[1, -1]], axis=-1)          # (B, 2H)
    return classifier(last, params["fc_w_t"], params["fc_b"])            # (B, C)


if __name__ == "__main__":
    B, T, IN_DIM, HIDDEN, N_LAYER, N_CLASSES = 2, 8, 16, 32, 2, 5

    key = jax.random.PRNGKey(0)
    key, kx, kp = jax.random.split(key, 3)
    x = jax.random.normal(kx, (B, T, IN_DIM), jnp.float32)
    params = init_params(kp, IN_DIM, HIDDEN, N_LAYER, N_CLASSES)

    out = gru_seq_forward(x, params, HIDDEN, N_LAYER)
    out = jax.block_until_ready(out)
    assert out.shape == (B, N_CLASSES), out.shape
    print("KERNEL_OK")
</pallas_src>

<mosaic_0001>
module attributes {stable_mosaic.version = 11 : i64} {
  func.func @_bigru_kernel(%arg0: i32, %arg1: i32, %arg2: memref<1x8x3x2x32xbf16, #tpu.memory_space<vmem>>, %arg3: memref<1x3x32x32xbf16, #tpu.memory_space<vmem>>, %arg4: memref<1x1x32xf32, #tpu.memory_space<vmem>>, %arg5: memref<1x8x2x32xbf16, #tpu.memory_space<vmem>>, %arg6: memref<2x32xf32, #tpu.memory_space<vmem>>) attributes {dimension_semantics = [#tpu.dimension_semantics<parallel>, #tpu.dimension_semantics<arbitrary>], iteration_bounds = array<i64: 2, 1>, scalar_prefetch = 0 : i64, scratch_operands = 1 : i64, tpu.core_type = #tpu.core_type<tc>, window_params = [{transform_indices = @transform_0, window_bounds = array<i64: 1, 8, 3, 2, 32>}, {transform_indices = @transform_1, window_bounds = array<i64: 1, 3, 32, 32>}, {transform_indices = @transform_2, window_bounds = array<i64: 1, 1, 32>}, {transform_indices = @transform_3, window_bounds = array<i64: 1, 8, 2, 32>}]} {
    %c0_i32 = arith.constant 0 : i32
    %0 = arith.cmpi eq, %arg1, %c0_i32 : i32
    %1 = arith.extui %0 : i1 to i32
    %c0_i32_0 = arith.constant 0 : i32
    %2 = arith.cmpi ne, %1, %c0_i32_0 : i32
    scf.if %2 {
      %cst_165 = arith.constant 0.000000e+00 : f32
      %379 = vector.broadcast %cst_165 : f32 to vector<2x32xf32>
      %c0_166 = arith.constant 0 : index
      %c0_167 = arith.constant 0 : index
      %380 = vector.load %arg6[%c0_166, %c0_167] : memref<2x32xf32, #tpu.memory_space<vmem>>, vector<2x32xf32>
      tpu.vector_store %arg6[%c0_166, %c0_167], %379 {strides = array<i32>} : memref<2x32xf32, #tpu.memory_space<vmem>>, vector<2x32xf32>,
    } else {
    }
    %c0 = arith.constant 0 : index
    %c0_1 = arith.constant 0 : index
    %c0_2 = arith.constant 0 : index
    %c0_3 = arith.constant 0 : index
    %3 = vector.load %arg3[%c0, %c0_1, %c0_2, %c0_3] : memref<1x3x32x32xbf16, #tpu.memory_space<vmem>>, vector<1x1x32x32xbf16>
    %4 = vector.shape_cast %3 : vector<1x1x32x32xbf16> to vector<32x32xbf16>
    %c0_4 = arith.constant 0 : index
    %c1 = arith.constant 1 : index
    %c0_5 = arith.constant 0 : index
    %c0_6 = arith.constant 0 : index
    %5 = vector.load %arg3[%c0_4, %c1, %c0_5, %c0_6] : memref<1x3x32x32xbf16, #tpu.memory_space<vmem>>, vector<1x1x32x32xbf16>
    %6 = vector.shape_cast %5 : vector<1x1x32x32xbf16> to vector<32x32xbf16>
    %c0_7 = arith.constant 0 : index
    %c2 = arith.constant 2 : index
    %c0_8 = arith.constant 0 : index
    %c0_9 = arith.constant 0 : index
    %7 = vector.load %arg3[%c0_7, %c2, %c0_8, %c0_9] : memref<1x3x32x32xbf16, #tpu.memory_space<vmem>>, vector<1x1x32x32xbf16>
    %8 = vector.shape_cast %7 : vector<1x1x32x32xbf16> to vector<32x32xbf16>
    %c0_10 = arith.constant 0 : index
    %c0_11 = arith.constant 0 : index
    %c0_12 = arith.constant 0 : index
    %9 = vector.load %arg4[%c0_10, %c0_11, %c0_12] : memref<1x1x32xf32, #tpu.memory_space<vmem>>, vector<1x1x32xf32>
    %10 = vector.shape_cast %9 : vector<1x1x32xf32> to vector<1x32xf32>
    %c0_i32_13 = arith.constant 0 : i32
    %c0_i32_14 = arith.constant 0 : i32
    %11 = arith.cmpi eq, %arg0, %c0_i32_14 : i32
    %c7_i32 = arith.constant 7 : i32
    %12 = arith.subi %c7_i32, %c0_i32_13 : i32
    %13 = arith.select %11, %c0_i32_13, %12 : i32
    %c0_15 = arith.constant 0 : index
    %14 = arith.index_cast %13 : i32 to index
    %c0_16 = arith.constant 0 : index
    %c0_17 = arith.constant 0 : index
    %c0_18 = arith.constant 0 : index
    %15 = vector.load %arg2[%c0_15, %14, %c0_16, %c0_17, %c0_18] : memref<1x8x3x2x32xbf16, #tpu.memory_space<vmem>>, vector<1x1x3x2x32xbf16>
    %16 = vector.shape_cast %15 : vector<1x1x3x2x32xbf16> to vector<3x2x32xbf16>
    %17 = arith.extf %16 : vector<3x2x32xbf16> to vector<3x2x32xf32>
    %c0_19 = arith.constant 0 : index
    %c0_20 = arith.constant 0 : index
    %18 = vector.load %arg6[%c0_19, %c0_20] : memref<2x32xf32, #tpu.memory_space<vmem>>, vector<2x32xf32>
    %19 = arith.truncf %18 : vector<2x32xf32> to vector<2x32xbf16>
    %cst = arith.constant dense<0.000000e+00> : vector<2x32xf32>
    %20 = tpu.matmul %19, %4, %cst {dimension_numbers = #tpu.dot_dimension_numbers<[1], [0], [0], [1], [0, 0, 1, 1], [], []>} : vector<2x32xbf16>, vector<32x32xbf16>, vector<2x32xf32> -> vector<2x32xf32>
    %cst_21 = arith.constant dense<0.000000e+00> : vector<2x32xf32>
    %21 = tpu.matmul %19, %6, %cst_21 {dimension_numbers = #tpu.dot_dimension_numbers<[1], [0], [0], [1], [0, 0, 1, 1], [], []>} : vector<2x32xbf16>, vector<32x32xbf16>, vector<2x32xf32> -> vector<2x32xf32>
    %cst_22 = arith.constant dense<0.000000e+00> : vector<2x32xf32>
    %22 = tpu.matmul %19, %8, %cst_22 {dimension_numbers = #tpu.dot_dimension_numbers<[1], [0], [0], [1], [0, 0, 1, 1], [], []>} : vector<2x32xbf16>, vector<32x32xbf16>, vector<2x32xf32> -> vector<2x32xf32>
    %23 = vector.extract_strided_slice %17 {offsets = [0, 0, 0], sizes = [1, 2, 32], strides = [1, 1, 1]} : vector<3x2x32xf32> to vector<1x2x32xf32>
    %24 = vector.shape_cast %23 : vector<1x2x32xf32> to vector<2x32xf32>
    %25 = arith.addf %24, %20 : vector<2x32xf32>
    %26 = arith.negf %25 : vector<2x32xf32>
    %27 = math.exp %26 : vector<2x32xf32>
    %cst_23 = arith.constant 1.000000e+00 : f32
    %28 = vector.broadcast %cst_23 : f32 to vector<2x32xf32>
    %29 = arith.addf %28, %27 : vector<2x32xf32>
    %30 = arith.divf %28, %29 : vector<2x32xf32>
    %31 = vector.extract_strided_slice %17 {offsets = [1, 0, 0], sizes = [1, 2, 32], strides = [1, 1, 1]} : vector<3x2x32xf32> to vector<1x2x32xf32>
    %32 = vector.shape_cast %31 : vector<1x2x32xf32> to vector<2x32xf32>
    %33 = arith.addf %32, %21 : vector<2x32xf32>
    %34 = arith.negf %33 : vector<2x32xf32>
    %35 = math.exp %34 : vector<2x32xf32>
    %cst_24 = arith.constant 1.000000e+00 : f32
    %36 = vector.broadcast %cst_24 : f32 to vector<2x32xf32>
    %37 = arith.addf %36, %35 : vector<2x32xf32>
    %38 = arith.divf %36, %37 : vector<2x32xf32>
    %39 = vector.extract_strided_slice %17 {offsets = [2, 0, 0], sizes = [1, 2, 32], strides = [1, 1, 1]} : vector<3x2x32xf32> to vector<1x2x32xf32>
    %40 = vector.shape_cast %39 : vector<1x2x32xf32> to vector<2x32xf32>
    %41 = vector.broadcast %10 : vector<1x32xf32> to vector<2x32xf32>
    %42 = arith.addf %22, %41 : vector<2x32xf32>
    %43 = arith.mulf %30, %42 : vector<2x32xf32>
    %44 = arith.addf %40, %43 : vector<2x32xf32>
    %45 = math.tanh %44 : vector<2x32xf32>
    %cst_25 = arith.constant 1.000000e+00 : f32
    %46 = vector.broadcast %cst_25 : f32 to vector<2x32xf32>
    %47 = arith.subf %46, %38 : vector<2x32xf32>
    %48 = arith.mulf %47, %45 : vector<2x32xf32>
    %49 = arith.mulf %38, %18 : vector<2x32xf32>
    %50 = arith.addf %48, %49 : vector<2x32xf32>
    %c0_26 = arith.constant 0 : index
    %c0_27 = arith.constant 0 : index
    %51 = vector.load %arg6[%c0_26, %c0_27] : memref<2x32xf32, #tpu.memory_space<vmem>>, vector<2x32xf32>
    tpu.vector_store %arg6[%c0_26, %c0_27], %50 {strides = array<i32>} : memref<2x32xf32, #tpu.memory_space<vmem>>, vector<2x32xf32>,
    %52 = arith.truncf %50 : vector<2x32xf32> to vector<2x32xbf16>
    %c0_28 = arith.constant 0 : index
    %53 = arith.index_cast %13 : i32 to index
    %c0_29 = arith.constant 0 : index
    %c0_30 = arith.constant 0 : index
    %54 = vector.load %arg5[%c0_28, %53, %c0_29, %c0_30] : memref<1x8x2x32xbf16, #tpu.memory_space<vmem>>, vector<1x1x2x32xbf16>
    %55 = vector.shape_cast %54 : vector<1x1x2x32xbf16> to vector<2x32xbf16>
    %56 = vector.shape_cast %52 : vector<2x32xbf16> to vector<1x1x2x32xbf16>
    tpu.vector_store %arg5[%c0_28, %53, %c0_29, %c0_30], %56 {strides = array<i32>} : memref<1x8x2x32xbf16, #tpu.memory_space<vmem>>, vector<1x1x2x32xbf16>,
    %c1_i32 = arith.constant 1 : i32
    %c0_i32_31 = arith.constant 0 : i32
    %57 = arith.cmpi eq, %arg0, %c0_i32_31 : i32
    %c7_i32_32 = arith.constant 7 : i32
    %58 = arith.subi %c7_i32_32, %c1_i32 : i32
    %59 = arith.select %57, %c1_i32, %58 : i32
    %c0_33 = arith.constant 0 : index
    %60 = arith.index_cast %59 : i32 to index
    %c0_34 = arith.constant 0 : index
    %c0_35 = arith.constant 0 : index
    %c0_36 = arith.constant 0 : index
    %61 = vector.load %arg2[%c0_33, %60, %c0_34, %c0_35, %c0_36] : memref<1x8x3x2x32xbf16, #tpu.memory_space<vmem>>, vector<1x1x3x2x32xbf16>
    %62 = vector.shape_cast %61 : vector<1x1x3x2x32xbf16> to vector<3x2x32xbf16>
    %63 = arith.extf %62 : vector<3x2x32xbf16> to vector<3x2x32xf32>
    %c0_37 = arith.constant 0 : index
    %c0_38 = arith.constant 0 : index
    %64 = vector.load %arg6[%c0_37, %c0_38] : memref<2x32xf32, #tpu.memory_space<vmem>>, vector<2x32xf32>
    %65 = arith.truncf %64 : vector<2x32xf32> to vector<2x32xbf16>
    %cst_39 = arith.constant dense<0.000000e+00> : vector<2x32xf32>
    %66 = tpu.matmul %65, %4, %cst_39 {dimension_numbers = #tpu.dot_dimension_numbers<[1], [0], [0], [1], [0, 0, 1, 1], [], []>} : vector<2x32xbf16>, vector<32x32xbf16>, vector<2x32xf32> -> vector<2x32xf32>
    %cst_40 = arith.constant dense<0.000000e+00> : vector<2x32xf32>
    %67 = tpu.matmul %65, %6, %cst_40 {dimension_numbers = #tpu.dot_dimension_numbers<[1], [0], [0], [1], [0, 0, 1, 1], [], []>} : vector<2x32xbf16>, vector<32x32xbf16>, vector<2x32xf32> -> vector<2x32xf32>
    %cst_41 = arith.constant dense<0.000000e+00> : vector<2x32xf32>
    %68 = tpu.matmul %65, %8, %cst_41 {dimension_numbers = #tpu.dot_dimension_numbers<[1], [0], [0], [1], [0, 0, 1, 1], [], []>} : vector<2x32xbf16>, vector<32x32xbf16>, vector<2x32xf32> -> vector<2x32xf32>
    %69 = vector.extract_strided_slice %63 {offsets = [0, 0, 0], sizes = [1, 2, 32], strides = [1, 1, 1]} : vector<3x2x32xf32> to vector<1x2x32xf32>
    %70 = vector.shape_cast %69 : vector<1x2x32xf32> to vector<2x32xf32>
    %71 = arith.addf %70, %66 : vector<2x32xf32>
    %72 = arith.negf %71 : vector<2x32xf32>
    %73 = math.exp %72 : vector<2x32xf32>
    %cst_42 = arith.constant 1.000000e+00 : f32
    %74 = vector.broadcast %cst_42 : f32 to vector<2x32xf32>
    %75 = arith.addf %74, %73 : vector<2x32xf32>
    %76 = arith.divf %74, %75 : vector<2x32xf32>
    %77 = vector.extract_strided_slice %63 {offsets = [1, 0, 0], sizes = [1, 2, 32], strides = [1, 1, 1]} : vector<3x2x32xf32> to vector<1x2x32xf32>
    %78 = vector.shape_cast %77 : vector<1x2x32xf32> to vector<2x32xf32>
    %79 = arith.addf %78, %67 : vector<2x32xf32>
    %80 = arith.negf %79 : vector<2x32xf32>
    %81 = math.exp %80 : vector<2x32xf32>
    %cst_43 = arith.constant 1.000000e+00 : f32
    %82 = vector.broadcast %cst_43 : f32 to vector<2x32xf32>
    %83 = arith.addf %82, %81 : vector<2x32xf32>
    %84 = arith.divf %82, %83 : vector<2x32xf32>
    %85 = vector.extract_strided_slice %63 {offsets = [2, 0, 0], sizes = [1, 2, 32], strides = [1, 1, 1]} : vector<3x2x32xf32> to vector<1x2x32xf32>
    %86 = vector.shape_cast %85 : vector<1x2x32xf32> to vector<2x32xf32>
    %87 = vector.broadcast %10 : vector<1x32xf32> to vector<2x32xf32>
    %88 = arith.addf %68, %87 : vector<2x32xf32>
    %89 = arith.mulf %76, %88 : vector<2x32xf32>
    %90 = arith.addf %86, %89 : vector<2x32xf32>
    %91 = math.tanh %90 : vector<2x32xf32>
    %cst_44 = arith.constant 1.000000e+00 : f32
    %92 = vector.broadcast %cst_44 : f32 to vector<2x32xf32>
    %93 = arith.subf %92, %84 : vector<2x32xf32>
    %94 = arith.mulf %93, %91 : vector<2x32xf32>
    %95 = arith.mulf %84, %64 : vector<2x32xf32>
    %96 = arith.addf %94, %95 : vector<2x32xf32>
    %c0_45 = arith.constant 0 : index
    %c0_46 = arith.constant 0 : index
    %97 = vector.load %arg6[%c0_45, %c0_46] : memref<2x32xf32, #tpu.memory_space<vmem>>, vector<2x32xf32>
    tpu.vector_store %arg6[%c0_45, %c0_46], %96 {strides = array<i32>} : memref<2x32xf32, #tpu.memory_space<vmem>>, vector<2x32xf32>,
    %98 = arith.truncf %96 : vector<2x32xf32> to vector<2x32xbf16>
    %c0_47 = arith.constant 0 : index
    %99 = arith.index_cast %59 : i32 to index
    %c0_48 = arith.constant 0 : index
    %c0_49 = arith.constant 0 : index
    %100 = vector.load %arg5[%c0_47, %99, %c0_48, %c0_49] : memref<1x8x2x32xbf16, #tpu.memory_space<vmem>>, vector<1x1x2x32xbf16>
    %101 = vector.shape_cast %100 : vector<1x1x2x32xbf16> to vector<2x32xbf16>
    %102 = vector.shape_cast %98 : vector<2x32xbf16> to vector<1x1x2x32xbf16>
    tpu.vector_store %arg5[%c0_47, %99, %c0_48, %c0_49], %102 {strides = array<i32>} : memref<1x8x2x32xbf16, #tpu.memory_space<vmem>>, vector<1x1x2x32xbf16>,
    %c2_i32 = arith.constant 2 : i32
    %c0_i32_50 = arith.constant 0 : i32
    %103 = arith.cmpi eq, %arg0, %c0_i32_50 : i32
    %c7_i32_51 = arith.constant 7 : i32
    %104 = arith.subi %c7_i32_51, %c2_i32 : i32
    %105 = arith.select %103, %c2_i32, %104 : i32
    %c0_52 = arith.constant 0 : index
    %106 = arith.index_cast %105 : i32 to index
    %c0_53 = arith.constant 0 : index
    %c0_54 = arith.constant 0 : index
    %c0_55 = arith.constant 0 : index
    %107 = vector.load %arg2[%c0_52, %106, %c0_53, %c0_54, %c0_55] : memref<1x8x3x2x32xbf16, #tpu.memory_space<vmem>>, vector<1x1x3x2x32xbf16>
    %108 = vector.shape_cast %107 : vector<1x1x3x2x32xbf16> to vector<3x2x32xbf16>
    %109 = arith.extf %108 : vector<3x2x32xbf16> to vector<3x2x32xf32>
    %c0_56 = arith.constant 0 : index
    %c0_57 = arith.constant 0 : index
    %110 = vector.load %arg6[%c0_56, %c0_57] : memref<2x32xf32, #tpu.memory_space<vmem>>, vector<2x32xf32>
    %111 = arith.truncf %110 : vector<2x32xf32> to vector<2x32xbf16>
    %cst_58 = arith.constant dense<0.000000e+00> : vector<2x32xf32>
    %112 = tpu.matmul %111, %4, %cst_58 {dimension_numbers = #tpu.dot_dimension_numbers<[1], [0], [0], [1], [0, 0, 1, 1], [], []>} : vector<2x32xbf16>, vector<32x32xbf16>, vector<2x32xf32> -> vector<2x32xf32>
    %cst_59 = arith.constant dense<0.000000e+00> : vector<2x32xf32>
    %113 = tpu.matmul %111, %6, %cst_59 {dimension_numbers = #tpu.dot_dimension_numbers<[1], [0], [0], [1], [0, 0, 1, 1], [], []>} : vector<2x32xbf16>, vector<32x32xbf16>, vector<2x32xf32> -> vector<2x32xf32>
    %cst_60 = arith.constant dense<0.000000e+00> : vector<2x32xf32>
    %114 = tpu.matmul %111, %8, %cst_60 {dimension_numbers = #tpu.dot_dimension_numbers<[1], [0], [0], [1], [0, 0, 1, 1], [], []>} : vector<2x32xbf16>, vector<32x32xbf16>, vector<2x32xf32> -> vector<2x32xf32>
    %115 = vector.extract_strided_slice %109 {offsets = [0, 0, 0], sizes = [1, 2, 32], strides = [1, 1, 1]} : vector<3x2x32xf32> to vector<1x2x32xf32>
    %116 = vector.shape_cast %115 : vector<1x2x32xf32> to vector<2x32xf32>
    %117 = arith.addf %116, %112 : vector<2x32xf32>
    %118 = arith.negf %117 : vector<2x32xf32>
    %119 = math.exp %118 : vector<2x32xf32>
    %cst_61 = arith.constant 1.000000e+00 : f32
    %120 = vector.broadcast %cst_61 : f32 to vector<2x32xf32>
    %121 = arith.addf %120, %119 : vector<2x32xf32>
    %122 = arith.divf %120, %121 : vector<2x32xf32>
    %123 = vector.extract_strided_slice %109 {offsets = [1, 0, 0], sizes = [1, 2, 32], strides = [1, 1, 1]} : vector<3x2x32xf32> to vector<1x2x32xf32>
    %124 = vector.shape_cast %123 : vector<1x2x32xf32> to vector<2x32xf32>
    %125 = arith.addf %124, %113 : vector<2x32xf32>
    %126 = arith.negf %125 : vector<2x32xf32>
    %127 = math.exp %126 : vector<2x32xf32>
    %cst_62 = arith.constant 1.000000e+00 : f32
    %128 = vector.broadcast %cst_62 : f32 to vector<2x32xf32>
    %129 = arith.addf %128, %127 : vector<2x32xf32>
    %130 = arith.divf %128, %129 : vector<2x32xf32>
    %131 = vector.extract_strided_slice %109 {offsets = [2, 0, 0], sizes = [1, 2, 32], strides = [1, 1, 1]} : vector<3x2x32xf32> to vector<1x2x32xf32>
    %132 = vector.shape_cast %131 : vector<1x2x32xf32> to vector<2x32xf32>
    %133 = vector.broadcast %10 : vector<1x32xf32> to vector<2x32xf32>
    %134 = arith.addf %114, %133 : vector<2x32xf32>
    %135 = arith.mulf %122, %134 : vector<2x32xf32>
    %136 = arith.addf %132, %135 : vector<2x32xf32>
    %137 = math.tanh %136 : vector<2x32xf32>
    %cst_63 = arith.constant 1.000000e+00 : f32
    %138 = vector.broadcast %cst_63 : f32 to vector<2x32xf32>
    %139 = arith.subf %138, %130 : vector<2x32xf32>
    %140 = arith.mulf %139, %137 : vector<2x32xf32>
    %141 = arith.mulf %130, %110 : vector<2x32xf32>
    %142 = arith.addf %140, %141 : vector<2x32xf32>
    %c0_64 = arith.constant 0 : index
    %c0_65 = arith.constant 0 : index
    %143 = vector.load %arg6[%c0_64, %c0_65] : memref<2x32xf32, #tpu.memory_space<vmem>>, vector<2x32xf32>
    tpu.vector_store %arg6[%c0_64, %c0_65], %142 {strides = array<i32>} : memref<2x32xf32, #tpu.memory_space<vmem>>, vector<2x32xf32>,
    %144 = arith.truncf %142 : vector<2x32xf32> to vector<2x32xbf16>
    %c0_66 = arith.constant 0 : index
    %145 = arith.index_cast %105 : i32 to index
    %c0_67 = arith.constant 0 : index
    %c0_68 = arith.constant 0 : index
    %146 = vector.load %arg5[%c0_66, %145, %c0_67, %c0_68] : memref<1x8x2x32xbf16, #tpu.memory_space<vmem>>, vector<1x1x2x32xbf16>
    %147 = vector.shape_cast %146 : vector<1x1x2x32xbf16> to vector<2x32xbf16>
    %148 = vector.shape_cast %144 : vector<2x32xbf16> to vector<1x1x2x32xbf16>
    tpu.vector_store %arg5[%c0_66, %145, %c0_67, %c0_68], %148 {strides = array<i32>} : memref<1x8x2x32xbf16, #tpu.memory_space<vmem>>, vector<1x1x2x32xbf16>,
    %c3_i32 = arith.constant 3 : i32
    %c0_i32_69 = arith.constant 0 : i32
    %149 = arith.cmpi eq, %arg0, %c0_i32_69 : i32
    %c7_i32_70 = arith.constant 7 : i32
    %150 = arith.subi %c7_i32_70, %c3_i32 : i32
    %151 = arith.select %149, %c3_i32, %150 : i32
    %c0_71 = arith.constant 0 : index
    %152 = arith.index_cast %151 : i32 to index
    %c0_72 = arith.constant 0 : index
    %c0_73 = arith.constant 0 : index
    %c0_74 = arith.constant 0 : index
    %153 = vector.load %arg2[%c0_71, %152, %c0_72, %c0_73, %c0_74] : memref<1x8x3x2x32xbf16, #tpu.memory_space<vmem>>, vector<1x1x3x2x32xbf16>
    %154 = vector.shape_cast %153 : vector<1x1x3x2x32xbf16> to vector<3x2x32xbf16>
    %155 = arith.extf %154 : vector<3x2x32xbf16> to vector<3x2x32xf32>
    %c0_75 = arith.constant 0 : index
    %c0_76 = arith.constant 0 : index
    %156 = vector.load %arg6[%c0_75, %c0_76] : memref<2x32xf32, #tpu.memory_space<vmem>>, vector<2x32xf32>
    %157 = arith.truncf %156 : vector<2x32xf32> to vector<2x32xbf16>
    %cst_77 = arith.constant dense<0.000000e+00> : vector<2x32xf32>
    %158 = tpu.matmul %157, %4, %cst_77 {dimension_numbers = #tpu.dot_dimension_numbers<[1], [0], [0], [1], [0, 0, 1, 1], [], []>} : vector<2x32xbf16>, vector<32x32xbf16>, vector<2x32xf32> -> vector<2x32xf32>
    %cst_78 = arith.constant dense<0.000000e+00> : vector<2x32xf32>
    %159 = tpu.matmul %157, %6, %cst_78 {dimension_numbers = #tpu.dot_dimension_numbers<[1], [0], [0], [1], [0, 0, 1, 1], [], []>} : vector<2x32xbf16>, vector<32x32xbf16>, vector<2x32xf32> -> vector<2x32xf32>
    %cst_79 = arith.constant dense<0.000000e+00> : vector<2x32xf32>
    %160 = tpu.matmul %157, %8, %cst_79 {dimension_numbers = #tpu.dot_dimension_numbers<[1], [0], [0], [1], [0, 0, 1, 1], [], []>} : vector<2x32xbf16>, vector<32x32xbf16>, vector<2x32xf32> -> vector<2x32xf32>
    %161 = vector.extract_strided_slice %155 {offsets = [0, 0, 0], sizes = [1, 2, 32], strides = [1, 1, 1]} : vector<3x2x32xf32> to vector<1x2x32xf32>
    %162 = vector.shape_cast %161 : vector<1x2x32xf32> to vector<2x32xf32>
    %163 = arith.addf %162, %158 : vector<2x32xf32>
    %164 = arith.negf %163 : vector<2x32xf32>
    %165 = math.exp %164 : vector<2x32xf32>
    %cst_80 = arith.constant 1.000000e+00 : f32
    %166 = vector.broadcast %cst_80 : f32 to vector<2x32xf32>
    %167 = arith.addf %166, %165 : vector<2x32xf32>
    %168 = arith.divf %166, %167 : vector<2x32xf32>
    %169 = vector.extract_strided_slice %155 {offsets = [1, 0, 0], sizes = [1, 2, 32], strides = [1, 1, 1]} : vector<3x2x32xf32> to vector<1x2x32xf32>
    %170 = vector.shape_cast %169 : vector<1x2x32xf32> to vector<2x32xf32>
    %171 = arith.addf %170, %159 : vector<2x32xf32>
    %172 = arith.negf %171 : vector<2x32xf32>
    %173 = math.exp %172 : vector<2x32xf32>
    %cst_81 = arith.constant 1.000000e+00 : f32
    %174 = vector.broadcast %cst_81 : f32 to vector<2x32xf32>
    %175 = arith.addf %174, %173 : vector<2x32xf32>
    %176 = arith.divf %174, %175 : vector<2x32xf32>
    %177 = vector.extract_strided_slice %155 {offsets = [2, 0, 0], sizes = [1, 2, 32], strides = [1, 1, 1]} : vector<3x2x32xf32> to vector<1x2x32xf32>
    %178 = vector.shape_cast %177 : vector<1x2x32xf32> to vector<2x32xf32>
    %179 = vector.broadcast %10 : vector<1x32xf32> to vector<2x32xf32>
    %180 = arith.addf %160, %179 : vector<2x32xf32>
    %181 = arith.mulf %168, %180 : vector<2x32xf32>
    %182 = arith.addf %178, %181 : vector<2x32xf32>
    %183 = math.tanh %182 : vector<2x32xf32>
    %cst_82 = arith.constant 1.000000e+00 : f32
    %184 = vector.broadcast %cst_82 : f32 to vector<2x32xf32>
    %185 = arith.subf %184, %176 : vector<2x32xf32>
    %186 = arith.mulf %185, %183 : vector<2x32xf32>
    %187 = arith.mulf %176, %156 : vector<2x32xf32>
    %188 = arith.addf %186, %187 : vector<2x32xf32>
    %c0_83 = arith.constant 0 : index
    %c0_84 = arith.constant 0 : index
    %189 = vector.load %arg6[%c0_83, %c0_84] : memref<2x32xf32, #tpu.memory_space<vmem>>, vector<2x32xf32>
    tpu.vector_store %arg6[%c0_83, %c0_84], %188 {strides = array<i32>} : memref<2x32xf32, #tpu.memory_space<vmem>>, vector<2x32xf32>,
    %190 = arith.truncf %188 : vector<2x32xf32> to vector<2x32xbf16>
    %c0_85 = arith.constant 0 : index
    %191 = arith.index_cast %151 : i32 to index
    %c0_86 = arith.constant 0 : index
    %c0_87 = arith.constant 0 : index
    %192 = vector.load %arg5[%c0_85, %191, %c0_86, %c0_87] : memref<1x8x2x32xbf16, #tpu.memory_space<vmem>>, vector<1x1x2x32xbf16>
    %193 = vector.shape_cast %192 : vector<1x1x2x32xbf16> to vector<2x32xbf16>
    %194 = vector.shape_cast %190 : vector<2x32xbf16> to vector<1x1x2x32xbf16>
    tpu.vector_store %arg5[%c0_85, %191, %c0_86, %c0_87], %194 {strides = array<i32>} : memref<1x8x2x32xbf16, #tpu.memory_space<vmem>>, vector<1x1x2x32xbf16>,
    %c4_i32 = arith.constant 4 : i32
    %c0_i32_88 = arith.constant 0 : i32
    %195 = arith.cmpi eq, %arg0, %c0_i32_88 : i32
    %c7_i32_89 = arith.constant 7 : i32
    %196 = arith.subi %c7_i32_89, %c4_i32 : i32
    %197 = arith.select %195, %c4_i32, %196 : i32
    %c0_90 = arith.constant 0 : index
    %198 = arith.index_cast %197 : i32 to index
    %c0_91 = arith.constant 0 : index
    %c0_92 = arith.constant 0 : index
    %c0_93 = arith.constant 0 : index
    %199 = vector.load %arg2[%c0_90, %198, %c0_91, %c0_92, %c0_93] : memref<1x8x3x2x32xbf16, #tpu.memory_space<vmem>>, vector<1x1x3x2x32xbf16>
    %200 = vector.shape_cast %199 : vector<1x1x3x2x32xbf16> to vector<3x2x32xbf16>
    %201 = arith.extf %200 : vector<3x2x32xbf16> to vector<3x2x32xf32>
    %c0_94 = arith.constant 0 : index
    %c0_95 = arith.constant 0 : index
    %202 = vector.load %arg6[%c0_94, %c0_95] : memref<2x32xf32, #tpu.memory_space<vmem>>, vector<2x32xf32>
    %203 = arith.truncf %202 : vector<2x32xf32> to vector<2x32xbf16>
    %cst_96 = arith.constant dense<0.000000e+00> : vector<2x32xf32>
    %204 = tpu.matmul %203, %4, %cst_96 {dimension_numbers = #tpu.dot_dimension_numbers<[1], [0], [0], [1], [0, 0, 1, 1], [], []>} : vector<2x32xbf16>, vector<32x32xbf16>, vector<2x32xf32> -> vector<2x32xf32>
    %cst_97 = arith.constant dense<0.000000e+00> : vector<2x32xf32>
    %205 = tpu.matmul %203, %6, %cst_97 {dimension_numbers = #tpu.dot_dimension_numbers<[1], [0], [0], [1], [0, 0, 1, 1], [], []>} : vector<2x32xbf16>, vector<32x32xbf16>, vector<2x32xf32> -> vector<2x32xf32>
    %cst_98 = arith.constant dense<0.000000e+00> : vector<2x32xf32>
    %206 = tpu.matmul %203, %8, %cst_98 {dimension_numbers = #tpu.dot_dimension_numbers<[1], [0], [0], [1], [0, 0, 1, 1], [], []>} : vector<2x32xbf16>, vector<32x32xbf16>, vector<2x32xf32> -> vector<2x32xf32>
    %207 = vector.extract_strided_slice %201 {offsets = [0, 0, 0], sizes = [1, 2, 32], strides = [1, 1, 1]} : vector<3x2x32xf32> to vector<1x2x32xf32>
    %208 = vector.shape_cast %207 : vector<1x2x32xf32> to vector<2x32xf32>
    %209 = arith.addf %208, %204 : vector<2x32xf32>
    %210 = arith.negf %209 : vector<2x32xf32>
    %211 = math.exp %210 : vector<2x32xf32>
    %cst_99 = arith.constant 1.000000e+00 : f32
    %212 = vector.broadcast %cst_99 : f32 to vector<2x32xf32>
    %213 = arith.addf %212, %211 : vector<2x32xf32>
    %214 = arith.divf %212, %213 : vector<2x32xf32>
    %215 = vector.extract_strided_slice %201 {offsets = [1, 0, 0], sizes = [1, 2, 32], strides = [1, 1, 1]} : vector<3x2x32xf32> to vector<1x2x32xf32>
    %216 = vector.shape_cast %215 : vector<1x2x32xf32> to vector<2x32xf32>
    %217 = arith.addf %216, %205 : vector<2x32xf32>
    %218 = arith.negf %217 : vector<2x32xf32>
    %219 = math.exp %218 : vector<2x32xf32>
    %cst_100 = arith.constant 1.000000e+00 : f32
    %220 = vector.broadcast %cst_100 : f32 to vector<2x32xf32>
    %221 = arith.addf %220, %219 : vector<2x32xf32>
    %222 = arith.divf %220, %221 : vector<2x32xf32>
    %223 = vector.extract_strided_slice %201 {offsets = [2, 0, 0], sizes = [1, 2, 32], strides = [1, 1, 1]} : vector<3x2x32xf32> to vector<1x2x32xf32>
    %224 = vector.shape_cast %223 : vector<1x2x32xf32> to vector<2x32xf32>
    %225 = vector.broadcast %10 : vector<1x32xf32> to vector<2x32xf32>
    %226 = arith.addf %206, %225 : vector<2x32xf32>
    %227 = arith.mulf %214, %226 : vector<2x32xf32>
    %228 = arith.addf %224, %227 : vector<2x32xf32>
    %229 = math.tanh %228 : vector<2x32xf32>
    %cst_101 = arith.constant 1.000000e+00 : f32
    %230 = vector.broadcast %cst_101 : f32 to vector<2x32xf32>
    %231 = arith.subf %230, %222 : vector<2x32xf32>
    %232 = arith.mulf %231, %229 : vector<2x32xf32>
    %233 = arith.mulf %222, %202 : vector<2x32xf32>
    %234 = arith.addf %232, %233 : vector<2x32xf32>
    %c0_102 = arith.constant 0 : index
    %c0_103 = arith.constant 0 : index
    %235 = vector.load %arg6[%c0_102, %c0_103] : memref<2x32xf32, #tpu.memory_space<vmem>>, vector<2x32xf32>
    tpu.vector_store %arg6[%c0_102, %c0_103], %234 {strides = array<i32>} : memref<2x32xf32, #tpu.memory_space<vmem>>, vector<2x32xf32>,
    %236 = arith.truncf %234 : vector<2x32xf32> to vector<2x32xbf16>
    %c0_104 = arith.constant 0 : index
    %237 = arith.index_cast %197 : i32 to index
    %c0_105 = arith.constant 0 : index
    %c0_106 = arith.constant 0 : index
    %238 = vector.load %arg5[%c0_104, %237, %c0_105, %c0_106] : memref<1x8x2x32xbf16, #tpu.memory_space<vmem>>, vector<1x1x2x32xbf16>
    %239 = vector.shape_cast %238 : vector<1x1x2x32xbf16> to vector<2x32xbf16>
    %240 = vector.shape_cast %236 : vector<2x32xbf16> to vector<1x1x2x32xbf16>
    tpu.vector_store %arg5[%c0_104, %237, %c0_105, %c0_106], %240 {strides = array<i32>} : memref<1x8x2x32xbf16, #tpu.memory_space<vmem>>, vector<1x1x2x32xbf16>,
    %c5_i32 = arith.constant 5 : i32
    %c0_i32_107 = arith.constant 0 : i32
    %241 = arith.cmpi eq, %arg0, %c0_i32_107 : i32
    %c7_i32_108 = arith.constant 7 : i32
    %242 = arith.subi %c7_i32_108, %c5_i32 : i32
    %243 = arith.select %241, %c5_i32, %242 : i32
    %c0_109 = arith.constant 0 : index
    %244 = arith.index_cast %243 : i32 to index
    %c0_110 = arith.constant 0 : index
    %c0_111 = arith.constant 0 : index
    %c0_112 = arith.constant 0 : index
    %245 = vector.load %arg2[%c0_109, %244, %c0_110, %c0_111, %c0_112] : memref<1x8x3x2x32xbf16, #tpu.memory_space<vmem>>, vector<1x1x3x2x32xbf16>
    %246 = vector.shape_cast %245 : vector<1x1x3x2x32xbf16> to vector<3x2x32xbf16>
    %247 = arith.extf %246 : vector<3x2x32xbf16> to vector<3x2x32xf32>
    %c0_113 = arith.constant 0 : index
    %c0_114 = arith.constant 0 : index
    %248 = vector.load %arg6[%c0_113, %c0_114] : memref<2x32xf32, #tpu.memory_space<vmem>>, vector<2x32xf32>
    %249 = arith.truncf %248 : vector<2x32xf32> to vector<2x32xbf16>
    %cst_115 = arith.constant dense<0.000000e+00> : vector<2x32xf32>
    %250 = tpu.matmul %249, %4, %cst_115 {dimension_numbers = #tpu.dot_dimension_numbers<[1], [0], [0], [1], [0, 0, 1, 1], [], []>} : vector<2x32xbf16>, vector<32x32xbf16>, vector<2x32xf32> -> vector<2x32xf32>
    %cst_116 = arith.constant dense<0.000000e+00> : vector<2x32xf32>
    %251 = tpu.matmul %249, %6, %cst_116 {dimension_numbers = #tpu.dot_dimension_numbers<[1], [0], [0], [1], [0, 0, 1, 1], [], []>} : vector<2x32xbf16>, vector<32x32xbf16>, vector<2x32xf32> -> vector<2x32xf32>
    %cst_117 = arith.constant dense<0.000000e+00> : vector<2x32xf32>
    %252 = tpu.matmul %249, %8, %cst_117 {dimension_numbers = #tpu.dot_dimension_numbers<[1], [0], [0], [1], [0, 0, 1, 1], [], []>} : vector<2x32xbf16>, vector<32x32xbf16>, vector<2x32xf32> -> vector<2x32xf32>
    %253 = vector.extract_strided_slice %247 {offsets = [0, 0, 0], sizes = [1, 2, 32], strides = [1, 1, 1]} : vector<3x2x32xf32> to vector<1x2x32xf32>
    %254 = vector.shape_cast %253 : vector<1x2x32xf32> to vector<2x32xf32>
    %255 = arith.addf %254, %250 : vector<2x32xf32>
    %256 = arith.negf %255 : vector<2x32xf32>
    %257 = math.exp %256 : vector<2x32xf32>
    %cst_118 = arith.constant 1.000000e+00 : f32
    %258 = vector.broadcast %cst_118 : f32 to vector<2x32xf32>
    %259 = arith.addf %258, %257 : vector<2x32xf32>
    %260 = arith.divf %258, %259 : vector<2x32xf32>
    %261 = vector.extract_strided_slice %247 {offsets = [1, 0, 0], sizes = [1, 2, 32], strides = [1, 1, 1]} : vector<3x2x32xf32> to vector<1x2x32xf32>
    %262 = vector.shape_cast %261 : vector<1x2x32xf32> to vector<2x32xf32>
    %263 = arith.addf %262, %251 : vector<2x32xf32>
    %264 = arith.negf %263 : vector<2x32xf32>
    %265 = math.exp %264 : vector<2x32xf32>
    %cst_119 = arith.constant 1.000000e+00 : f32
    %266 = vector.broadcast %cst_119 : f32 to vector<2x32xf32>
    %267 = arith.addf %266, %265 : vector<2x32xf32>
    %268 = arith.divf %266, %267 : vector<2x32xf32>
    %269 = vector.extract_strided_slice %247 {offsets = [2, 0, 0], sizes = [1, 2, 32], strides = [1, 1, 1]} : vector<3x2x32xf32> to vector<1x2x32xf32>
    %270 = vector.shape_cast %269 : vector<1x2x32xf32> to vector<2x32xf32>
    %271 = vector.broadcast %10 : vector<1x32xf32> to vector<2x32xf32>
    %272 = arith.addf %252, %271 : vector<2x32xf32>
    %273 = arith.mulf %260, %272 : vector<2x32xf32>
    %274 = arith.addf %270, %273 : vector<2x32xf32>
    %275 = math.tanh %274 : vector<2x32xf32>
    %cst_120 = arith.constant 1.000000e+00 : f32
    %276 = vector.broadcast %cst_120 : f32 to vector<2x32xf32>
    %277 = arith.subf %276, %268 : vector<2x32xf32>
    %278 = arith.mulf %277, %275 : vector<2x32xf32>
    %279 = arith.mulf %268, %248 : vector<2x32xf32>
    %280 = arith.addf %278, %279 : vector<2x32xf32>
    %c0_121 = arith.constant 0 : index
    %c0_122 = arith.constant 0 : index
    %281 = vector.load %arg6[%c0_121, %c0_122] : memref<2x32xf32, #tpu.memory_space<vmem>>, vector<2x32xf32>
    tpu.vector_store %arg6[%c0_121, %c0_122], %280 {strides = array<i32>} : memref<2x32xf32, #tpu.memory_space<vmem>>, vector<2x32xf32>,
    %282 = arith.truncf %280 : vector<2x32xf32> to vector<2x32xbf16>
    %c0_123 = arith.constant 0 : index
    %283 = arith.index_cast %243 : i32 to index
    %c0_124 = arith.constant 0 : index
    %c0_125 = arith.constant 0 : index
    %284 = vector.load %arg5[%c0_123, %283, %c0_124, %c0_125] : memref<1x8x2x32xbf16, #tpu.memory_space<vmem>>, vector<1x1x2x32xbf16>
    %285 = vector.shape_cast %284 : vector<1x1x2x32xbf16> to vector<2x32xbf16>
    %286 = vector.shape_cast %282 : vector<2x32xbf16> to vector<1x1x2x32xbf16>
    tpu.vector_store %arg5[%c0_123, %283, %c0_124, %c0_125], %286 {strides = array<i32>} : memref<1x8x2x32xbf16, #tpu.memory_space<vmem>>, vector<1x1x2x32xbf16>,
    %c6_i32 = arith.constant 6 : i32
    %c0_i32_126 = arith.constant 0 : i32
    %287 = arith.cmpi eq, %arg0, %c0_i32_126 : i32
    %c7_i32_127 = arith.constant 7 : i32
    %288 = arith.subi %c7_i32_127, %c6_i32 : i32
    %289 = arith.select %287, %c6_i32, %288 : i32
    %c0_128 = arith.constant 0 : index
    %290 = arith.index_cast %289 : i32 to index
    %c0_129 = arith.constant 0 : index
    %c0_130 = arith.constant 0 : index
    %c0_131 = arith.constant 0 : index
    %291 = vector.load %arg2[%c0_128, %290, %c0_129, %c0_130, %c0_131] : memref<1x8x3x2x32xbf16, #tpu.memory_space<vmem>>, vector<1x1x3x2x32xbf16>
    %292 = vector.shape_cast %291 : vector<1x1x3x2x32xbf16> to vector<3x2x32xbf16>
    %293 = arith.extf %292 : vector<3x2x32xbf16> to vector<3x2x32xf32>
    %c0_132 = arith.constant 0 : index
    %c0_133 = arith.constant 0 : index
    %294 = vector.load %arg6[%c0_132, %c0_133] : memref<2x32xf32, #tpu.memory_space<vmem>>, vector<2x32xf32>
    %295 = arith.truncf %294 : vector<2x32xf32> to vector<2x32xbf16>
    %cst_134 = arith.constant dense<0.000000e+00> : vector<2x32xf32>
    %296 = tpu.matmul %295, %4, %cst_134 {dimension_numbers = #tpu.dot_dimension_numbers<[1], [0], [0], [1], [0, 0, 1, 1], [], []>} : vector<2x32xbf16>, vector<32x32xbf16>, vector<2x32xf32> -> vector<2x32xf32>
    %cst_135 = arith.constant dense<0.000000e+00> : vector<2x32xf32>
    %297 = tpu.matmul %295, %6, %cst_135 {dimension_numbers = #tpu.dot_dimension_numbers<[1], [0], [0], [1], [0, 0, 1, 1], [], []>} : vector<2x32xbf16>, vector<32x32xbf16>, vector<2x32xf32> -> vector<2x32xf32>
    %cst_136 = arith.constant dense<0.000000e+00> : vector<2x32xf32>
    %298 = tpu.matmul %295, %8, %cst_136 {dimension_numbers = #tpu.dot_dimension_numbers<[1], [0], [0], [1], [0, 0, 1, 1], [], []>} : vector<2x32xbf16>, vector<32x32xbf16>, vector<2x32xf32> -> vector<2x32xf32>
    %299 = vector.extract_strided_slice %293 {offsets = [0, 0, 0], sizes = [1, 2, 32], strides = [1, 1, 1]} : vector<3x2x32xf32> to vector<1x2x32xf32>
    %300 = vector.shape_cast %299 : vector<1x2x32xf32> to vector<2x32xf32>
    %301 = arith.addf %300, %296 : vector<2x32xf32>
    %302 = arith.negf %301 : vector<2x32xf32>
    %303 = math.exp %302 : vector<2x32xf32>
    %cst_137 = arith.constant 1.000000e+00 : f32
    %304 = vector.broadcast %cst_137 : f32 to vector<2x32xf32>
    %305 = arith.addf %304, %303 : vector<2x32xf32>
    %306 = arith.divf %304, %305 : vector<2x32xf32>
    %307 = vector.extract_strided_slice %293 {offsets = [1, 0, 0], sizes = [1, 2, 32], strides = [1, 1, 1]} : vector<3x2x32xf32> to vector<1x2x32xf32>
    %308 = vector.shape_cast %307 : vector<1x2x32xf32> to vector<2x32xf32>
    %309 = arith.addf %308, %297 : vector<2x32xf32>
    %310 = arith.negf %309 : vector<2x32xf32>
    %311 = math.exp %310 : vector<2x32xf32>
    %cst_138 = arith.constant 1.000000e+00 : f32
    %312 = vector.broadcast %cst_138 : f32 to vector<2x32xf32>
    %313 = arith.addf %312, %311 : vector<2x32xf32>
    %314 = arith.divf %312, %313 : vector<2x32xf32>
    %315 = vector.extract_strided_slice %293 {offsets = [2, 0, 0], sizes = [1, 2, 32], strides = [1, 1, 1]} : vector<3x2x32xf32> to vector<1x2x32xf32>
    %316 = vector.shape_cast %315 : vector<1x2x32xf32> to vector<2x32xf32>
    %317 = vector.broadcast %10 : vector<1x32xf32> to vector<2x32xf32>
    %318 = arith.addf %298, %317 : vector<2x32xf32>
    %319 = arith.mulf %306, %318 : vector<2x32xf32>
    %320 = arith.addf %316, %319 : vector<2x32xf32>
    %321 = math.tanh %320 : vector<2x32xf32>
    %cst_139 = arith.constant 1.000000e+00 : f32
    %322 = vector.broadcast %cst_139 : f32 to vector<2x32xf32>
    %323 = arith.subf %322, %314 : vector<2x32xf32>
    %324 = arith.mulf %323, %321 : vector<2x32xf32>
    %325 = arith.mulf %314, %294 : vector<2x32xf32>
    %326 = arith.addf %324, %325 : vector<2x32xf32>
    %c0_140 = arith.constant 0 : index
    %c0_141 = arith.constant 0 : index
    %327 = vector.load %arg6[%c0_140, %c0_141] : memref<2x32xf32, #tpu.memory_space<vmem>>, vector<2x32xf32>
    tpu.vector_store %arg6[%c0_140, %c0_141], %326 {strides = array<i32>} : memref<2x32xf32, #tpu.memory_space<vmem>>, vector<2x32xf32>,
    %328 = arith.truncf %326 : vector<2x32xf32> to vector<2x32xbf16>
    %c0_142 = arith.constant 0 : index
    %329 = arith.index_cast %289 : i32 to index
    %c0_143 = arith.constant 0 : index
    %c0_144 = arith.constant 0 : index
    %330 = vector.load %arg5[%c0_142, %329, %c0_143, %c0_144] : memref<1x8x2x32xbf16, #tpu.memory_space<vmem>>, vector<1x1x2x32xbf16>
    %331 = vector.shape_cast %330 : vector<1x1x2x32xbf16> to vector<2x32xbf16>
    %332 = vector.shape_cast %328 : vector<2x32xbf16> to vector<1x1x2x32xbf16>
    tpu.vector_store %arg5[%c0_142, %329, %c0_143, %c0_144], %332 {strides = array<i32>} : memref<1x8x2x32xbf16, #tpu.memory_space<vmem>>, vector<1x1x2x32xbf16>,
    %c7_i32_145 = arith.constant 7 : i32
    %c0_i32_146 = arith.constant 0 : i32
    %333 = arith.cmpi eq, %arg0, %c0_i32_146 : i32
    %c7_i32_147 = arith.constant 7 : i32
    %334 = arith.subi %c7_i32_147, %c7_i32_145 : i32
    %335 = arith.select %333, %c7_i32_145, %334 : i32
    %c0_148 = arith.constant 0 : index
    %336 = arith.index_cast %335 : i32 to index
    %c0_149 = arith.constant 0 : index
    %c0_150 = arith.constant 0 : index
    %c0_151 = arith.constant 0 : index
    %337 = vector.load %arg2[%c0_148, %336, %c0_149, %c0_150, %c0_151] : memref<1x8x3x2x32xbf16, #tpu.memory_space<vmem>>, vector<1x1x3x2x32xbf16>
    %338 = vector.shape_cast %337 : vector<1x1x3x2x32xbf16> to vector<3x2x32xbf16>
    %339 = arith.extf %338 : vector<3x2x32xbf16> to vector<3x2x32xf32>
    %c0_152 = arith.constant 0 : index
    %c0_153 = arith.constant 0 : index
    %340 = vector.load %arg6[%c0_152, %c0_153] : memref<2x32xf32, #tpu.memory_space<vmem>>, vector<2x32xf32>
    %341 = arith.truncf %340 : vector<2x32xf32> to vector<2x32xbf16>
    %cst_154 = arith.constant dense<0.000000e+00> : vector<2x32xf32>
    %342 = tpu.matmul %341, %4, %cst_154 {dimension_numbers = #tpu.dot_dimension_numbers<[1], [0], [0], [1], [0, 0, 1, 1], [], []>} : vector<2x32xbf16>, vector<32x32xbf16>, vector<2x32xf32> -> vector<2x32xf32>
    %cst_155 = arith.constant dense<0.000000e+00> : vector<2x32xf32>
    %343 = tpu.matmul %341, %6, %cst_155 {dimension_numbers = #tpu.dot_dimension_numbers<[1], [0], [0], [1], [0, 0, 1, 1], [], []>} : vector<2x32xbf16>, vector<32x32xbf16>, vector<2x32xf32> -> vector<2x32xf32>
    %cst_156 = arith.constant dense<0.000000e+00> : vector<2x32xf32>
    %344 = tpu.matmul %341, %8, %cst_156 {dimension_numbers = #tpu.dot_dimension_numbers<[1], [0], [0], [1], [0, 0, 1, 1], [], []>} : vector<2x32xbf16>, vector<32x32xbf16>, vector<2x32xf32> -> vector<2x32xf32>
    %345 = vector.extract_strided_slice %339 {offsets = [0, 0, 0], sizes = [1, 2, 32], strides = [1, 1, 1]} : vector<3x2x32xf32> to vector<1x2x32xf32>
    %346 = vector.shape_cast %345 : vector<1x2x32xf32> to vector<2x32xf32>
    %347 = arith.addf %346, %342 : vector<2x32xf32>
    %348 = arith.negf %347 : vector<2x32xf32>
    %349 = math.exp %348 : vector<2x32xf32>
    %cst_157 = arith.constant 1.000000e+00 : f32
    %350 = vector.broadcast %cst_157 : f32 to vector<2x32xf32>
    %351 = arith.addf %350, %349 : vector<2x32xf32>
    %352 = arith.divf %350, %351 : vector<2x32xf32>
    %353 = vector.extract_strided_slice %339 {offsets = [1, 0, 0], sizes = [1, 2, 32], strides = [1, 1, 1]} : vector<3x2x32xf32> to vector<1x2x32xf32>
    %354 = vector.shape_cast %353 : vector<1x2x32xf32> to vector<2x32xf32>
    %355 = arith.addf %354, %343 : vector<2x32xf32>
    %356 = arith.negf %355 : vector<2x32xf32>
    %357 = math.exp %356 : vector<2x32xf32>
    %cst_158 = arith.constant 1.000000e+00 : f32
    %358 = vector.broadcast %cst_158 : f32 to vector<2x32xf32>
    %359 = arith.addf %358, %357 : vector<2x32xf32>
    %360 = arith.divf %358, %359 : vector<2x32xf32>
    %361 = vector.extract_strided_slice %339 {offsets = [2, 0, 0], sizes = [1, 2, 32], strides = [1, 1, 1]} : vector<3x2x32xf32> to vector<1x2x32xf32>
    %362 = vector.shape_cast %361 : vector<1x2x32xf32> to vector<2x32xf32>
    %363 = vector.broadcast %10 : vector<1x32xf32> to vector<2x32xf32>
    %364 = arith.addf %344, %363 : vector<2x32xf32>
    %365 = arith.mulf %352, %364 : vector<2x32xf32>
    %366 = arith.addf %362, %365 : vector<2x32xf32>
    %367 = math.tanh %366 : vector<2x32xf32>
    %cst_159 = arith.constant 1.000000e+00 : f32
    %368 = vector.broadcast %cst_159 : f32 to vector<2x32xf32>
    %369 = arith.subf %368, %360 : vector<2x32xf32>
    %370 = arith.mulf %369, %367 : vector<2x32xf32>
    %371 = arith.mulf %360, %340 : vector<2x32xf32>
    %372 = arith.addf %370, %371 : vector<2x32xf32>
    %c0_160 = arith.constant 0 : index
    %c0_161 = arith.constant 0 : index
    %373 = vector.load %arg6[%c0_160, %c0_161] : memref<2x32xf32, #tpu.memory_space<vmem>>, vector<2x32xf32>
    tpu.vector_store %arg6[%c0_160, %c0_161], %372 {strides = array<i32>} : memref<2x32xf32, #tpu.memory_space<vmem>>, vector<2x32xf32>,
    %374 = arith.truncf %372 : vector<2x32xf32> to vector<2x32xbf16>
    %c0_162 = arith.constant 0 : index
    %375 = arith.index_cast %335 : i32 to index
    %c0_163 = arith.constant 0 : index
    %c0_164 = arith.constant 0 : index
    %376 = vector.load %arg5[%c0_162, %375, %c0_163, %c0_164] : memref<1x8x2x32xbf16, #tpu.memory_space<vmem>>, vector<1x1x2x32xbf16>
    %377 = vector.shape_cast %376 : vector<1x1x2x32xbf16> to vector<2x32xbf16>
    %378 = vector.shape_cast %374 : vector<2x32xbf16> to vector<1x1x2x32xbf16>
    tpu.vector_store %arg5[%c0_162, %375, %c0_163, %c0_164], %378 {strides = array<i32>} : memref<1x8x2x32xbf16, #tpu.memory_space<vmem>>, vector<1x1x2x32xbf16>,
    %c8_i32 = arith.constant 8 : i32
    return
  }
  func.func @transform_0(%arg0: i32, %arg1: i32) -> (i32, i32, i32, i32, i32) {
    %c2_i32 = arith.constant 2 : i32
    %0 = arith.muli %c2_i32, %arg1 : i32
    %c0_i32 = arith.constant 0 : i32
    %1 = arith.subi %c0_i32, %0 : i32
    %2 = arith.muli %arg0, %1 : i32
    %3 = arith.addi %arg1, %2 : i32
    %c0_i32_0 = arith.constant 0 : i32
    %c0_i32_1 = arith.constant 0 : i32
    %c0_i32_2 = arith.constant 0 : i32
    %c0_i32_3 = arith.constant 0 : i32
    return %arg0, %3, %c0_i32_0, %c0_i32_1, %c0_i32_2 : i32, i32, i32, i32, i32
  }
  func.func @transform_1(%arg0: i32, %arg1: i32) -> (i32, i32, i32, i32) {
    %c0_i32 = arith.constant 0 : i32
    %c0_i32_0 = arith.constant 0 : i32
    %c0_i32_1 = arith.constant 0 : i32
    %c0_i32_2 = arith.constant 0 : i32
    return %arg0, %c0_i32, %c0_i32_0, %c0_i32_1 : i32, i32, i32, i32
  }
  func.func @transform_2(%arg0: i32, %arg1: i32) -> (i32, i32, i32) {
    %c0_i32 = arith.constant 0 : i32
    %c0_i32_0 = arith.constant 0 : i32
    %c0_i32_1 = arith.constant 0 : i32
    return %arg0, %c0_i32, %c0_i32_0 : i32, i32, i32
  }
  func.func @transform_3(%arg0: i32, %arg1: i32) -> (i32, i32, i32, i32) {
    %c2_i32 = arith.constant 2 : i32
    %0 = arith.muli %c2_i32, %arg1 : i32
    %c0_i32 = arith.constant 0 : i32
    %1 = arith.subi %c0_i32, %0 : i32
    %2 = arith.muli %arg0, %1 : i32
    %3 = arith.addi %arg1, %2 : i32
    %c0_i32_0 = arith.constant 0 : i32
    %c0_i32_1 = arith.constant 0 : i32
    %c0_i32_2 = arith.constant 0 : i32
    return %arg0, %3, %c0_i32_0, %c0_i32_1 : i32, i32, i32, i32
  }
}

</mosaic_0001>

<bundles_post_ra>
// kernel: tpu_custom_call.1
= control target key start
LH: loop header
LB: loop body
LE: loop exit
PB: predicated region body
PF: predicated region fallthrough
CT: control target
= control target key end

     0   :  { %s2940_s0 = inlined_call_operand.hbm [shape: bf16[2,8,3,2,32], index: 0, kind: input, shape index: {}]   ;;  %s2941_s1 = inlined_call_operand.hbm [shape: bf16[2,3,32,32], index: 1, kind: input, shape index: {}]   ;;  %s2942_s2 = inlined_call_operand.vmem [shape: f32[2,1,32], index: 2, kind: input, shape index: {}]   ;;  %s2943_s3 = inlined_call_operand.hbm [shape: bf16[2,8,2,32], index: 3, kind: output, shape index: {}]  }
   0x1   :  { %2944 = sst [smem:[#allocation12_spill]] %s2940_s0 }
   0x2   :  { %8 = vsyncpa [#allocation4], 0 }
   0x3   :  { %10 = vsyncpa [#allocation4 + $0x1], 0 }
   0x4   :  { %11 = vsyncpa [#allocation7], 0 }
   0x5   :  { %13 = vsyncpa [#allocation7 + $0x1], 0 }
   0x6   :  { %14 = vsyncpa [#allocation5], 0 }
   0x7   :  { %16 = vsyncpa [#allocation5 + $0x1], 0  ;;  %s2470_s12 = smov 0   ;;  %s2472_s13 = smov 0  }
   0x8   :  { %s2474_s14 = smov 0   ;;  %s2476_s15 = smov 0  }
   0x9   :  { %s2478_s16 = smov 0   ;;  %s2480_s17 = smov 0  }
   0xa LB: > { %s1797_s18 = sadd.s32 4294967295, %s2437_s17   ;;  %s1798_s19 = sadd.s32 4294967294, %s2437_s17   ;;  %s2437_s17 = sphi %s2480_s17, %s22_s17   ;;  %s2433_s16 = sphi %s2478_s16, %s2956_s16   ;;  %s2429_s15 = sphi %s2476_s15, %s2955_s15   ;;  %s2425_s14 = sphi %s2474_s14, %s2954_s14   ;;  %s2421_s13 = sphi %s2472_s13, %s2953_s13   ;;  %s2417_s12 = sphi %s2470_s12, %s2952_s12  }
   0xb   : > { %s34_s20 = sadd.s32 1, %s2433_s16  ;;  %s51_s21 = sadd.s32 1, %s2425_s14 }
   0xc   : > { %p36_p0 = scmp.ge.s32.totalorder %s34_s20, 2  ;;  %p58_p1 = scmp.ne.s32.totalorder %s2425_s14, %s2421_s13 }
   0xd   : > { %p59_p2 = scmp.eq.s32.totalorder %s2437_s17, 0  ;;  %p64_p3 = scmp.ne.s32.totalorder %s2421_s13, %s2417_s12 }
   0xe   : > { %s2958_s20 = smov (%p36_p0, %s34_s20), 0  ;;  %p65_p5 = scmp.eq.s32.totalorder %s1797_s18, 0 }
   0xf   : > { %p2511_p4 = por %p59_p2, %p58_p1  ;;  %s46_s23 = ssub.s32 %s2433_s16, %s2958_s20 }
  0x10   : > { %p150_p6 = scmp.eq.s32.totalorder %s1797_s18, 1  ;;  %p49_p7 = scmp.eq.s32.totalorder %s46_s23, 0 }
  0x11   : > { %p2517_p8 = por %p65_p5, %p64_p3  ;;  %p156_p10 = scmp.eq.s32.totalorder %s1798_s19, 1 }
  0x12   : > { %p2521_p9 = por %p150_p6, %p58_p1  ;;  %p1800_p12 = scmp.ge.s32.totalorder %s2437_s17, 2 }
  0x13   : > { %s2526_s26 = scalar_select %p49_p7, %s2425_s14, %s51_s21  }
  0x14   : > { %p2528_p11 = por %p156_p10, %p64_p3  ;;  %p2153_p13 = scmp.lt.s32.totalorder %s2437_s17, 2 }
  0x15   : > { %s2535_s28 = sand.u32 1, %s2425_s14   ;;  %s2131_s30 = smul.u32 384, %s2433_s16 }
  0x16   : > { %s2130_s29 = smul.u32 24, %s2535_s28  ;;  %p2541_p0 = pnand %p2153_p13, %p2511_p4 }
  0x17   : > { %s2950_s0 = sld [smem:[#allocation12_spill]]  ;;  %p1803_p1 = scmp.ge.s32.totalorder %s2437_s17, 1 }
  0x18   : > { %s180_s8 = scalar_lea.vmem [#allocation3], %s2130_s29  ;;  %s177_s10 = scalar_lea.sflag [#allocation4], %s2535_s28 }
  0x19   : > { %s194_s9 = sshll.u32 %s180_s8, 4  ;;  %p2299_p2 = pneg %p2541_p0  ;;  %s195_s9 = int_to_ptr.vmem [resolvable:$true] %s194_s9 }
  0x1a   : > { %s2310_s11 = scalar_lea.vmem %s195_s9, 384  ;;  %s2439_s18 = smov [#allocation3]  }
  0x1b   : > { %p2311_p3 = scmp.ne.s32.totalorder %s195_s9, %s2310_s11  ;;  %s2315_s19 = sshll.u32 %s2439_s18, 4  ;;  %s2316_s19 = int_to_ptr.vmem [resolvable:$false] %s2315_s19 }
  0x1c   : > { %s2317_s21 = scalar_lea.vmem %s2316_s19, 768  ;;  %p2318_p6 = scmp.lt.s32.totalorder %s195_s9, %s2316_s19 }
  0x1d   : > { %s193_s7 = scalar_lea.hbm %s2950_s0, %s2131_s30  ;;  %p2313_p4 = pnand %p2311_p3, %p2299_p2 }
  0x1e   : > { %p2319_p7 = scmp.lt.s32.totalorder %s2317_s21, %s2310_s11 }
  0x1f   : > { %p2314_p5 = pneg %p2313_p4 }
  0x20   : > { %p2320_p10 = por %p2319_p7, %p2318_p6 }
  0x22   : > { %p2321_p13 = pnand %p2320_p10, %p2314_p5 }
  0x24   : > { %2324 = shalt.err (!%p2321_p13)
}
  0x25   : > { %s2440_s22 = smov 16   ;;  %s2441_s23 = smov 1  }
  0x26   : > { %2145 = dma.hbm_to_vmem [thread:$0]  (!%p2541_p0), %s193_s7, 384, %s195_s9, %s177_s10, %s2440_s22, %s2440_s22, %s2441_s23  }
  0x27   : > { %p229_p3 = scmp.lt.s32.totalorder %s2437_s17, 3  ;;  %s2132_s29 = smul.u32 48, %s2535_s28 }
  0x28   : > { %s2133_s5 = smul.u32 768, %s2433_s16  ;;  %s205_s21 = scalar_lea.sflag [#allocation7], %s2535_s28 }
  0x29   : > { %p2561_p4 = pnand %p1803_p1, %p229_p3  ;;  %s208_s18 = scalar_lea.vmem [#allocation6], %s2132_s29 }
  0x2a   : > { %s214_s11 = scalar_lea.hbm %s2941_s1, %s2133_s5  ;;  %s215_s19 = sshll.u32 %s208_s18, 4  ;;  %s216_s19 = int_to_ptr.vmem [resolvable:$true] %s215_s19 }
  0x2b   : > { %s2338_s0 = scalar_lea.vmem %s216_s19, 768  ;;  %s2442_s7 = smov [#allocation6]  }
  0x2c   : > { %p2339_p5 = scmp.ne.s32.totalorder %s216_s19, %s2338_s0  ;;  %s2343_s9 = sshll.u32 %s2442_s7, 4  ;;  %s2344_s9 = int_to_ptr.vmem [resolvable:$false] %s2343_s9 }
  0x2d   : > { %s2345_s10 = scalar_lea.vmem %s2344_s9, 1536  ;;  %p2346_p1 = scmp.lt.s32.totalorder %s216_s19, %s2344_s9 }
  0x2e   : > { %p2341_p6 = pnand %p2339_p5, %p2299_p2  ;;  %p2347_p10 = scmp.lt.s32.totalorder %s2345_s10, %s2338_s0 }
  0x30   : > { %p2342_p7 = pneg %p2341_p6  ;;  %p2348_p13 = por %p2347_p10, %p2346_p1 }
  0x32   : > { %p2349_p3 = pnand %p2348_p13, %p2342_p7 }
  0x34   : > { %2352 = shalt.err (!%p2349_p3)
}
  0x35   : > { %s2443_s22 = smov 64   ;;  %s2444_s23 = smov 4  }
  0x36   : > { %2148 = dma.hbm_to_vmem [thread:$0]  (!%p2541_p0), %s214_s11, 768, %s216_s19, %s205_s21, %s2443_s22, %s2443_s22, %s2444_s23  }
  0x37   : > { %233 = sbr.rel (%p2561_p4) target bundleno = 2154 (0x86a), region = 32  ;;  %s2578_s28 = sand.u32 (!%p2561_p4), 1, %s2421_s13  }
  0x38   : > { %s2134_s29 = smul.u32 (!%p2561_p4), 24, %s2578_s28  ;;  %s236_s5 = scalar_lea.sflag (!%p2561_p4), [#allocation4], %s2578_s28 }
  0x3a   : > { %s2582_s0 = scalar_lea.vmem (!%p2561_p4), [#allocation3], %s2134_s29 }
  0x3c   : > { %2404 = dma.done.wait (%p2517_p8), %s236_s5, 384  }
  0x3d   : > { %2406 = vsyncadd (%p2517_p8), %s236_s5, 4294966912  ;;  %s2135_s4 = smul.u32 48, %s2578_s28  ;;  %s245_s30 = scalar_lea.sflag [#allocation7], %s2578_s28 }
  0x3f   : > { %s248_s6 = scalar_lea.vmem [#allocation6], %s2135_s4 }
  0x40   : > { %2408 = dma.done.wait (%p2517_p8), %s245_s30, 768  }
  0x41   : > { %2410 = vsyncadd (%p2517_p8), %s245_s30, 4294966528  ;;  %vm297_vm0 = vcmask 254976   ;;  %v2445_v0 = vmov 0.0   ;;  %vm2446_vm1 = vmmov 0   ;;  %v2602_v1 = vld [vmem:[%s248_s6 + $0x8] sm:$0xff]   ;;  %v2604_v2 = vld [vmem:[%s248_s6] sm:$0xff]  }
  0x42   : > { %1938 = vmatprep.subr.bf16.mxu0 %v2445_v0  ;;  %1942 = vmatprep.mubr.msk.bf16.mxu0 %vm2446_vm1, %v2445_v0  ;;  %298 = vst.msk [vmem:[#allocation2] sm:$0x3] %vm297_vm0, %v2445_v0  ;;  %v2610_v4 = vld [vmem:[%s248_s6 + $0x18] sm:$0xff]   ;;  %v2615_v6 = vld [vmem:[%s248_s6 + $0x10] sm:$0xff]   ;;  %vm338_vm2 = vcmask 261120   ;;  %v2619_v7 = vld [vmem:[%s248_s6 + $0x28] sm:$0xff]  }
  0x43   : > { %1946 = vmatprep.subr.bf16.mxu1 %v2445_v0  ;;  %1950 = vmatprep.mubr.msk.bf16.mxu1 %vm2446_vm1, %v2445_v0  ;;  %v2625_v8 = vld [vmem:[%s248_s6 + $0x20] sm:$0xff]   ;;  %p314_p8 = scmp.eq.s32.totalorder %s2429_s15, 0  ;;  %p284_p0 = scmp.lt.s32.totalorder %s2429_s15, 1  ;;  %vm517_vm3 = vcmask 253952  }
  0x44   : > { %1939 = vmatpush3.bf16.msra.mxu0 %v2602_v1  ;;  %1947 = vmatpush3.bf16.msra.mxu1 %v2610_v4  ;;  %s1804_s9 = sshll.u32 %s2578_s28, 3 }
  0x45   : > { %1940 = vmatprep.subr.bf16.mxu0 %v2445_v0  ;;  %1948 = vmatprep.subr.bf16.mxu1 %v2445_v0  ;;  %s2650_s24 = scalar_select %p314_p8, 0, 7 }
  0x46   : > { %s285_s18 = scalar_select %p284_p0, %s2429_s15, 1 }
  0x47   : > { %s316_s8 = smul.u32 3, %s2650_s24  ;;  %s2669_s10 = scalar_lea.vmem [#allocation8], %s1804_s9 }
  0x48   : > { %1941 = vmatpush3.bf16.msra.mxu0 %v2604_v2  ;;  %1949 = vmatpush3.bf16.msra.mxu1 %v2615_v6  ;;  %s286_s7 = scalar_lea.vmem %s2942_s2, %s285_s18  ;;  %s516_s22 = scalar_lea.vmem %s2669_s10, %s2650_s24 [#allocation8] }
  0x49   : > { %v2607_v3 = vld [vmem:[#allocation2] sm:$0x3]  ;;  %1954 = vmatprep.subr.bf16.mxu0 %v2445_v0  ;;  %1962 = vmatprep.subr.bf16.mxu1 %v2445_v0  ;;  %s2654_s11 = scalar_lea.vmem %s2582_s0, %s316_s8 [#allocation3] }
  0x4a   : > { %v325_v5 = vpack.c.bf16 %v2607_v3, %v2607_v3  ;;  %v318_v9 = vld [vmem:[%s2654_s11] sm:$0x1]  ;;  %v319_v11 = vld [vmem:[%s2654_s11 + $0x1] sm:$0x1]  ;;  %v320_v34 = vld [vmem:[%s2654_s11 + $0x2] sm:$0x1] }
  0x4b   : > { %v321_v10 = vunpack.c.l.bf16 %v318_v9  ;;  %v322_v14 = vunpack.c.l.bf16 %v319_v11  ;;  %v2663_v32 = vld [vmem:[%s286_s7] ss:$0 sm:$0xff]  ;;  %v323_v36 = vunpack.c.l.bf16 %v320_v34  ;;  %s2698_s23 = scalar_select %p314_p8, 1, 6 }
  0x4c   : > { %1943 = vmatmul.mubr.msk.bf16.vlgmr.msra.gmra.mxu0 %vm338_vm2, %v325_v5  ;;  %1951 = vmatmul.mubr.msk.bf16.vlgmr.msra.gmra.mxu1 %vm338_vm2, %v325_v5  ;;  %s2730_s30 = scalar_select %p314_p8, 2, 5 }
  0x4d   : > { %1955 = vmatpush3.bf16.msra.mxu0 %v2619_v7  ;;  %1958 = vmatprep.mubr.msk.bf16.mxu0 %vm2446_vm1, %v2445_v0  ;;  %s520_s29 = smul.u32 3, %s2698_s23  ;;  %s676_s4 = scalar_lea.vmem %s2669_s10, %s2698_s23 [#allocation8] }
  0x4e   : > { %1956 = vmatprep.subr.bf16.mxu0 %v2445_v0  ;;  %1963 = vmatpush3.bf16.msra.mxu1 %v2602_v1  ;;  %s679_s6 = smul.u32 3, %s2730_s30  ;;  %s835_s8 = scalar_lea.vmem %s2669_s10, %s2730_s30 [#allocation8] }
  0x4f   : > { %1966 = vmatprep.mubr.msk.bf16.mxu1 %vm2446_vm1, %v2445_v0  ;;  %1964 = vmatprep.subr.bf16.mxu1 %v2445_v0  ;;  %s521_s5 = scalar_lea.vmem %s2582_s0, %s520_s29 [#allocation3] }
  0x50   : > { %v522_v49 = vld [vmem:[%s521_s5] sm:$0x1]  ;;  %v523_v52 = vld [vmem:[%s521_s5 + $0x1] sm:$0x1]  ;;  %s680_s24 = scalar_lea.vmem %s2582_s0, %s679_s6 [#allocation3] }
  0x51   : > { %1957 = vmatpush3.bf16.msra.mxu0 %v2625_v8  ;;  %v525_v50 = vunpack.c.l.bf16 %v522_v49  ;;  %v526_v58 = vunpack.c.l.bf16 %v523_v52  ;;  %s2762_s11 = scalar_select %p314_p8, 3, 4 }
  0x52   : > { %1970 = vmatprep.subr.bf16.mxu0 %v2445_v0  ;;  %1965 = vmatpush3.bf16.msra.mxu1 %v2604_v2  ;;  %s2794_s7 = scalar_select %p314_p8, 4, 3 }
  0x53   : > { %1978 = vmatprep.subr.bf16.mxu1 %v2445_v0  ;;  %s838_s18 = smul.u32 3, %s2762_s11  ;;  %s994_s21 = scalar_lea.vmem %s2669_s10, %s2762_s11 [#allocation8] }
  0x54   : > { %1959 = vmatmul.mubr.msk.bf16.vlgmr.msra.gmra.mxu0 %vm338_vm2, %v325_v5  ;;  %s997_s9 = smul.u32 3, %s2794_s7  ;;  %s1153_s23 = scalar_lea.vmem %s2669_s10, %s2794_s7 [#allocation8] }
  0x55   : > { %1971 = vmatpush3.bf16.msra.mxu0 %v2610_v4  ;;  %1974 = vmatprep.mubr.msk.bf16.mxu0 %vm2446_vm1, %v2445_v0  ;;  %s839_s19 = scalar_lea.vmem %s2582_s0, %s838_s18 [#allocation3]  ;;  %s1652_s7 = sshll.u32 %s2669_s10, 4  ;;  %s2890_s7 = int_to_ptr.vmem [resolvable:$true] %s1652_s7 }
  0x56   : > { %1972 = vmatprep.subr.bf16.mxu0 %v2445_v0  ;;  %s2826_s29 = scalar_select %p314_p8, 5, 2 }
  0x57   : > { %s2857_s6 = scalar_select %p314_p8, 6, 1 }
  0x58   : > { %s1312_s30 = scalar_lea.vmem %s2669_s10, %s2826_s29 [#allocation8] }
  0x59   : > { %1973 = vmatpush3.bf16.msra.mxu0 %v2615_v6  ;;  %s1471_s11 = scalar_lea.vmem %s2669_s10, %s2857_s6 [#allocation8] }
  0x5a   : > { %1986 = vmatprep.subr.bf16.mxu0 %v2445_v0  ;;  %s2876_s18 = scalar_select %p314_p8, 7, 0 }
 0x10c   : > { %v376_v12 = vpop.f32.mrf.mxu0  ;;  %v428_v17 = vpop.f32.mrf.mxu1 }
 0x10d   : > { %v434_v13 = vadd.f32 %v376_v12, %v321_v10  ;;  %v441_v19 = vadd.f32 %v428_v17, %v322_v14 }
 0x10e   : > { %v1944_v15 = vpop.f32.mrf.mxu0  ;;  %v1952_v20 = vpop.f32.mrf.mxu1 }
 0x10f   : > { %v1819_v16 = vmul.f32 -1.442695, %v434_v13  ;;  %v1820_v24 = vmul.f32 -1.442695, %v441_v19  ;;  %v524_v15 = vld [vmem:[%s521_s5 + $0x2] sm:$0x1] }
 0x110   : > { %v379_v18 = vpop.f32.mrf.mxu0  ;;  %v431_v22 = vpop.f32.mrf.mxu1  ;;  %v527_v17 = vunpack.c.l.bf16 %v524_v15  ;;  %s1156_s5 = smul.u32 3, %s2826_s29 }
 0x111   : > { %2217 = vpow2.f32 %v1819_v16 }
 0x112   : > { %v1945_v21 = vpop.f32.mrf.mxu0  ;;  %v1953_v25 = vpop.f32.mrf.mxu1  ;;  %2219 = vpow2.f32 %v1820_v24 }
 0x114   : > { %v500_v23 = vpop.f32.mrf.mxu0 }
 0x115   : > { %v501_v35 = vadd.f32 %v2663_v32, %v500_v23 }
 0x116   : > { %v1960_v26 = vpop.f32.mrf.mxu0 }
 0x118   : > { %v503_v27 = vpop.f32.mrf.mxu0 }
 0x11a   : > { %v1961_v28 = vpop.f32.mrf.mxu0 }
 0x11e   : > { %v2218_v29 = vpop.eup %2217 }
 0x11f   : > { %v438_v30 = vadd.f32 1.0, %v2218_v29  ;;  %v2220_v31 = vpop.eup %2219 }
 0x120   : > { %v445_v33 = vadd.f32 1.0, %v2220_v31  ;;  %v681_v31 = vld [vmem:[%s680_s24] sm:$0x1] }
 0x121   : > { %2221 = vrcp.f32 %v438_v30 }
 0x122   : > { %2223 = vrcp.f32 %v445_v33  ;;  %v684_v33 = vunpack.c.l.bf16 %v681_v31 }
 0x12e   : > { %v2222_v37 = vpop.eup %2221 }
 0x12f   : > { %v506_v38 = vmul.f32 %v2222_v37, %v501_v35  ;;  %v2224_v40 = vpop.eup %2223  ;;  %v682_v35 = vld [vmem:[%s680_s24 + $0x1] sm:$0x1] }
 0x130   : > { %v509_v41 = vsub.f32 1.0, %v2224_v40  ;;  %v511_v43 = vmul.f32 %v2224_v40, %v2607_v3 }
 0x131   : > { %v507_v39 = vadd.f32 %v506_v38, %v323_v36 }
 0x133   : > { %2225 = vtanh.f32 %v507_v39 }
 0x140   : > { %v2226_v42 = vpop.eup %2225 }
 0x141   : > { %v510_v44 = vmul.f32 %v2226_v42, %v509_v41  ;;  %v685_v41 = vunpack.c.l.bf16 %v682_v35 }
 0x143   : > { %v512_v45 = vadd.f32 %v511_v43, %v510_v44 }
 0x145   : > { %514 = vst.msk [vmem:[#allocation2] sm:$0x3] %vm297_vm0, %v512_v45  ;;  %v515_v46 = vpack.c.bf16 %v512_v45, %v512_v45 }
 0x147   : > { %518 = vst.msk [vmem:[%s516_s22] sm:$0x1] %vm517_vm3, %v515_v46  ;;  %s998_s22 = scalar_lea.vmem %s2582_s0, %s997_s9 [#allocation3]  ;;  %s1630_s9 = scalar_lea.vmem %s2669_s10, %s2876_s18 [#allocation8] }
 0x148   : > { %s2447_s10 = smov [#allocation8]  }
 0x14c   : > { %v528_v47 = vld [vmem:[#allocation2] sm:$0x3] }
 0x14d   : > { %v529_v48 = vpack.c.bf16 %v528_v47, %v528_v47 }
 0x14f   : > { %1967 = vmatmul.mubr.msk.bf16.vlgmr.msra.gmra.mxu1 %vm338_vm2, %v529_v48  ;;  %1975 = vmatmul.mubr.msk.bf16.vlgmr.msra.gmra.mxu0 %vm338_vm2, %v529_v48 }
 0x150   : > { %1979 = vmatpush3.bf16.msra.mxu1 %v2619_v7  ;;  %1982 = vmatprep.mubr.msk.bf16.mxu1 %vm2446_vm1, %v2445_v0 }
 0x151   : > { %1980 = vmatprep.subr.bf16.mxu1 %v2445_v0  ;;  %1987 = vmatpush3.bf16.msra.mxu0 %v2602_v1 }
 0x152   : > { %1988 = vmatprep.subr.bf16.mxu0 %v2445_v0  ;;  %1990 = vmatprep.mubr.msk.bf16.mxu0 %vm2446_vm1, %v2445_v0 }
 0x154   : > { %1981 = vmatpush3.bf16.msra.mxu1 %v2625_v8 }
 0x155   : > { %1994 = vmatprep.subr.bf16.mxu1 %v2445_v0  ;;  %1989 = vmatpush3.bf16.msra.mxu0 %v2604_v2 }
 0x156   : > { %2002 = vmatprep.subr.bf16.mxu0 %v2445_v0 }
 0x157   : > { %1983 = vmatmul.mubr.msk.bf16.vlgmr.msra.gmra.mxu1 %vm338_vm2, %v529_v48 }
 0x158   : > { %1995 = vmatpush3.bf16.msra.mxu1 %v2610_v4  ;;  %1998 = vmatprep.mubr.msk.bf16.mxu1 %vm2446_vm1, %v2445_v0 }
 0x159   : > { %1996 = vmatprep.subr.bf16.mxu1 %v2445_v0 }
 0x15c   : > { %1997 = vmatpush3.bf16.msra.mxu1 %v2615_v6 }
 0x15d   : > { %2010 = vmatprep.subr.bf16.mxu1 %v2445_v0 }
 0x20f   : > { %v567_v51 = vpop.f32.mrf.mxu1  ;;  %v607_v53 = vpop.f32.mrf.mxu0 }
 0x210   : > { %v613_v54 = vadd.f32 %v567_v51, %v525_v50  ;;  %v620_v63 = vadd.f32 %v607_v53, %v526_v58 }
 0x211   : > { %v1968_v55 = vpop.f32.mrf.mxu1  ;;  %v1976_v56 = vpop.f32.mrf.mxu0 }
 0x212   : > { %v1827_v57 = vmul.f32 -1.442695, %v613_v54  ;;  %v1828_v9 = vmul.f32 -1.442695, %v620_v63  ;;  %v683_v55 = vld [vmem:[%s680_s24 + $0x2] sm:$0x1] }
 0x213   : > { %v570_v59 = vpop.f32.mrf.mxu1  ;;  %v610_v60 = vpop.f32.mrf.mxu0  ;;  %s1315_s24 = smul.u32 3, %s2857_s6 }
 0x214   : > { %2227 = vpow2.f32 %v1827_v57  ;;  %v686_v57 = vunpack.c.l.bf16 %v683_v55 }
 0x215   : > { %v1969_v61 = vpop.f32.mrf.mxu1  ;;  %v1977_v62 = vpop.f32.mrf.mxu0  ;;  %2229 = vpow2.f32 %v1828_v9 }
 0x217   : > { %v661_v3 = vpop.f32.mrf.mxu1 }
 0x218   : > { %v662_v18 = vadd.f32 %v2663_v32, %v661_v3 }
 0x219   : > { %v1984_v5 = vpop.f32.mrf.mxu1 }
 0x21b   : > { %v664_v10 = vpop.f32.mrf.mxu1 }
 0x21d   : > { %v1985_v11 = vpop.f32.mrf.mxu1 }
 0x221   : > { %v2228_v12 = vpop.eup %2227 }
 0x222   : > { %v617_v13 = vadd.f32 1.0, %v2228_v12  ;;  %v2230_v14 = vpop.eup %2229 }
 0x223   : > { %v624_v16 = vadd.f32 1.0, %v2230_v14  ;;  %v840_v14 = vld [vmem:[%s839_s19] sm:$0x1] }
 0x224   : > { %2231 = vrcp.f32 %v617_v13  ;;  %v843_v15 = vunpack.c.l.bf16 %v840_v14 }
 0x225   : > { %2233 = vrcp.f32 %v624_v16 }
 0x231   : > { %v2232_v19 = vpop.eup %2231 }
 0x232   : > { %v667_v20 = vmul.f32 %v2232_v19, %v662_v18  ;;  %v2234_v22 = vpop.eup %2233 }
 0x233   : > { %v670_v23 = vsub.f32 1.0, %v2234_v22  ;;  %v672_v25 = vmul.f32 %v2234_v22, %v528_v47 }
 0x234   : > { %v668_v21 = vadd.f32 %v667_v20, %v527_v17  ;;  %v841_v17 = vld [vmem:[%s839_s19 + $0x1] sm:$0x1] }
 0x236   : > { %2235 = vtanh.f32 %v668_v21 }
 0x243   : > { %v2236_v24 = vpop.eup %2235 }
 0x244   : > { %v671_v26 = vmul.f32 %v2236_v24, %v670_v23  ;;  %v844_v23 = vunpack.c.l.bf16 %v841_v17 }
 0x246   : > { %v673_v27 = vadd.f32 %v672_v25, %v671_v26 }
 0x248   : > { %674 = vst.msk [vmem:[#allocation2] sm:$0x3] %vm297_vm0, %v673_v27  ;;  %v675_v28 = vpack.c.bf16 %v673_v27, %v673_v27 }
 0x24a   : > { %677 = vst.msk [vmem:[%s676_s4] sm:$0x1] %vm517_vm3, %v675_v28  ;;  %s1157_s4 = scalar_lea.vmem %s2582_s0, %s1156_s5 [#allocation3]  ;;  %s1633_s5 = scalar_lea.sflag [#allocation5], %s2578_s28 }
 0x24f   : > { %v687_v29 = vld [vmem:[#allocation2] sm:$0x3] }
 0x250   : > { %v688_v30 = vpack.c.bf16 %v687_v29, %v687_v29 }
 0x252   : > { %1991 = vmatmul.mubr.msk.bf16.vlgmr.msra.gmra.mxu0 %vm338_vm2, %v688_v30  ;;  %1999 = vmatmul.mubr.msk.bf16.vlgmr.msra.gmra.mxu1 %vm338_vm2, %v688_v30 }
 0x253   : > { %2003 = vmatpush3.bf16.msra.mxu0 %v2619_v7  ;;  %2006 = vmatprep.mubr.msk.bf16.mxu0 %vm2446_vm1, %v2445_v0 }
 0x254   : > { %2004 = vmatprep.subr.bf16.mxu0 %v2445_v0  ;;  %2011 = vmatpush3.bf16.msra.mxu1 %v2602_v1 }
 0x255   : > { %2012 = vmatprep.subr.bf16.mxu1 %v2445_v0  ;;  %2014 = vmatprep.mubr.msk.bf16.mxu1 %vm2446_vm1, %v2445_v0 }
 0x257   : > { %2005 = vmatpush3.bf16.msra.mxu0 %v2625_v8 }
 0x258   : > { %2018 = vmatprep.subr.bf16.mxu0 %v2445_v0  ;;  %2013 = vmatpush3.bf16.msra.mxu1 %v2604_v2 }
 0x259   : > { %2026 = vmatprep.subr.bf16.mxu1 %v2445_v0 }
 0x25a   : > { %2007 = vmatmul.mubr.msk.bf16.vlgmr.msra.gmra.mxu0 %vm338_vm2, %v688_v30 }
 0x25b   : > { %2019 = vmatpush3.bf16.msra.mxu0 %v2610_v4  ;;  %2022 = vmatprep.mubr.msk.bf16.mxu0 %vm2446_vm1, %v2445_v0 }
 0x25c   : > { %2020 = vmatprep.subr.bf16.mxu0 %v2445_v0 }
 0x25f   : > { %2021 = vmatpush3.bf16.msra.mxu0 %v2615_v6 }
 0x260   : > { %2034 = vmatprep.subr.bf16.mxu0 %v2445_v0 }
 0x312   : > { %v726_v34 = vpop.f32.mrf.mxu0  ;;  %v766_v36 = vpop.f32.mrf.mxu1 }
 0x313   : > { %v772_v37 = vadd.f32 %v726_v34, %v684_v33  ;;  %v779_v46 = vadd.f32 %v766_v36, %v685_v41 }
 0x314   : > { %v1992_v38 = vpop.f32.mrf.mxu0  ;;  %v2000_v39 = vpop.f32.mrf.mxu1 }
 0x315   : > { %v1832_v40 = vmul.f32 -1.442695, %v772_v37  ;;  %v1833_v49 = vmul.f32 -1.442695, %v779_v46  ;;  %v842_v38 = vld [vmem:[%s839_s19 + $0x2] sm:$0x1] }
 0x316   : > { %v729_v42 = vpop.f32.mrf.mxu0  ;;  %v769_v43 = vpop.f32.mrf.mxu1  ;;  %s1474_s19 = smul.u32 3, %s2876_s18 }
 0x317   : > { %2237 = vpow2.f32 %v1832_v40  ;;  %v845_v40 = vunpack.c.l.bf16 %v842_v38 }
 0x318   : > { %v1993_v44 = vpop.f32.mrf.mxu0  ;;  %v2001_v45 = vpop.f32.mrf.mxu1  ;;  %2239 = vpow2.f32 %v1833_v49 }
 0x31a   : > { %v820_v47 = vpop.f32.mrf.mxu0 }
 0x31b   : > { %v821_v58 = vadd.f32 %v2663_v32, %v820_v47 }
 0x31c   : > { %v2008_v48 = vpop.f32.mrf.mxu0 }
 0x31e   : > { %v823_v50 = vpop.f32.mrf.mxu0 }
 0x320   : > { %v2009_v51 = vpop.f32.mrf.mxu0 }
 0x324   : > { %v2238_v52 = vpop.eup %2237 }
 0x325   : > { %v776_v53 = vadd.f32 1.0, %v2238_v52  ;;  %v2240_v54 = vpop.eup %2239 }
 0x326   : > { %v783_v56 = vadd.f32 1.0, %v2240_v54  ;;  %v999_v54 = vld [vmem:[%s998_s22] sm:$0x1] }
 0x327   : > { %2241 = vrcp.f32 %v776_v53  ;;  %v1002_v55 = vunpack.c.l.bf16 %v999_v54 }
 0x328   : > { %2243 = vrcp.f32 %v783_v56 }
 0x334   : > { %v2242_v59 = vpop.eup %2241 }
 0x335   : > { %v826_v60 = vmul.f32 %v2242_v59, %v821_v58  ;;  %v2244_v62 = vpop.eup %2243 }
 0x336   : > { %v829_v63 = vsub.f32 1.0, %v2244_v62  ;;  %v831_v5 = vmul.f32 %v2244_v62, %v687_v29 }
 0x337   : > { %v827_v61 = vadd.f32 %v826_v60, %v686_v57  ;;  %v1000_v57 = vld [vmem:[%s998_s22 + $0x1] sm:$0x1] }
 0x339   : > { %2245 = vtanh.f32 %v827_v61 }
 0x346   : > { %v2246_v3 = vpop.eup %2245 }
 0x347   : > { %v830_v9 = vmul.f32 %v2246_v3, %v829_v63  ;;  %v1003_v63 = vunpack.c.l.bf16 %v1000_v57 }
 0x349   : > { %v832_v10 = vadd.f32 %v831_v5, %v830_v9 }
 0x34b   : > { %833 = vst.msk [vmem:[#allocation2] sm:$0x3] %vm297_vm0, %v832_v10  ;;  %v834_v11 = vpack.c.bf16 %v832_v10, %v832_v10 }
 0x34d   : > { %836 = vst.msk [vmem:[%s835_s8] sm:$0x1] %vm517_vm3, %v834_v11  ;;  %s1316_s8 = scalar_lea.vmem %s2582_s0, %s1315_s24 [#allocation3] }
 0x352   : > { %v846_v12 = vld [vmem:[#allocation2] sm:$0x3] }
 0x353   : > { %v847_v13 = vpack.c.bf16 %v846_v12, %v846_v12 }
 0x355   : > { %2015 = vmatmul.mubr.msk.bf16.vlgmr.msra.gmra.mxu1 %vm338_vm2, %v847_v13  ;;  %2023 = vmatmul.mubr.msk.bf16.vlgmr.msra.gmra.mxu0 %vm338_vm2, %v847_v13 }
 0x356   : > { %2027 = vmatpush3.bf16.msra.mxu1 %v2619_v7  ;;  %2030 = vmatprep.mubr.msk.bf16.mxu1 %vm2446_vm1, %v2445_v0 }
 0x357   : > { %2028 = vmatprep.subr.bf16.mxu1 %v2445_v0  ;;  %2035 = vmatpush3.bf16.msra.mxu0 %v2602_v1 }
 0x358   : > { %2036 = vmatprep.subr.bf16.mxu0 %v2445_v0  ;;  %2038 = vmatprep.mubr.msk.bf16.mxu0 %vm2446_vm1, %v2445_v0 }
 0x35a   : > { %2029 = vmatpush3.bf16.msra.mxu1 %v2625_v8 }
 0x35b   : > { %2042 = vmatprep.subr.bf16.mxu1 %v2445_v0  ;;  %2037 = vmatpush3.bf16.msra.mxu0 %v2604_v2 }
 0x35c   : > { %2050 = vmatprep.subr.bf16.mxu0 %v2445_v0 }
 0x35d   : > { %2031 = vmatmul.mubr.msk.bf16.vlgmr.msra.gmra.mxu1 %vm338_vm2, %v847_v13 }
 0x35e   : > { %2043 = vmatpush3.bf16.msra.mxu1 %v2610_v4  ;;  %2046 = vmatprep.mubr.msk.bf16.mxu1 %vm2446_vm1, %v2445_v0 }
 0x35f   : > { %2044 = vmatprep.subr.bf16.mxu1 %v2445_v0 }
 0x362   : > { %2045 = vmatpush3.bf16.msra.mxu1 %v2615_v6 }
 0x363   : > { %2058 = vmatprep.subr.bf16.mxu1 %v2445_v0 }
 0x415   : > { %v885_v16 = vpop.f32.mrf.mxu1  ;;  %v925_v18 = vpop.f32.mrf.mxu0 }
 0x416   : > { %v931_v19 = vadd.f32 %v885_v16, %v843_v15  ;;  %v938_v28 = vadd.f32 %v925_v18, %v844_v23 }
 0x417   : > { %v2016_v20 = vpop.f32.mrf.mxu1  ;;  %v2024_v21 = vpop.f32.mrf.mxu0 }
 0x418   : > { %v1837_v22 = vmul.f32 -1.442695, %v931_v19  ;;  %v1838_v31 = vmul.f32 -1.442695, %v938_v28  ;;  %v1001_v20 = vld [vmem:[%s998_s22 + $0x2] sm:$0x1] }
 0x419   : > { %v888_v24 = vpop.f32.mrf.mxu1  ;;  %v928_v25 = vpop.f32.mrf.mxu0 }
 0x41a   : > { %2247 = vpow2.f32 %v1837_v22  ;;  %v1004_v22 = vunpack.c.l.bf16 %v1001_v20  ;;  %v1318_v20 = vld [vmem:[%s1316_s8 + $0x1] sm:$0x1] }
 0x41b   : > { %v2017_v26 = vpop.f32.mrf.mxu1  ;;  %v2025_v27 = vpop.f32.mrf.mxu0  ;;  %2249 = vpow2.f32 %v1838_v31 }
 0x41d   : > { %v979_v29 = vpop.f32.mrf.mxu1 }
 0x41e   : > { %v980_v41 = vadd.f32 %v2663_v32, %v979_v29 }
 0x41f   : > { %v2032_v30 = vpop.f32.mrf.mxu1 }
 0x421   : > { %v982_v33 = vpop.f32.mrf.mxu1 }
 0x423   : > { %v2033_v34 = vpop.f32.mrf.mxu1 }
 0x427   : > { %v2248_v35 = vpop.eup %2247 }
 0x428   : > { %v935_v36 = vadd.f32 1.0, %v2248_v35  ;;  %v2250_v37 = vpop.eup %2249 }
 0x429   : > { %v942_v39 = vadd.f32 1.0, %v2250_v37  ;;  %v1158_v37 = vld [vmem:[%s1157_s4] sm:$0x1] }
 0x42a   : > { %2251 = vrcp.f32 %v935_v36  ;;  %v1161_v38 = vunpack.c.l.bf16 %v1158_v37 }
 0x42b   : > { %2253 = vrcp.f32 %v942_v39 }
 0x437   : > { %v2252_v42 = vpop.eup %2251 }
 0x438   : > { %v985_v43 = vmul.f32 %v2252_v42, %v980_v41  ;;  %v2254_v45 = vpop.eup %2253 }
 0x439   : > { %v988_v46 = vsub.f32 1.0, %v2254_v45  ;;  %v990_v48 = vmul.f32 %v2254_v45, %v846_v12 }
 0x43a   : > { %v986_v44 = vadd.f32 %v985_v43, %v845_v40  ;;  %v1159_v40 = vld [vmem:[%s1157_s4 + $0x1] sm:$0x1] }
 0x43c   : > { %2255 = vtanh.f32 %v986_v44 }
 0x449   : > { %v2256_v47 = vpop.eup %2255 }
 0x44a   : > { %v989_v49 = vmul.f32 %v2256_v47, %v988_v46  ;;  %v1162_v46 = vunpack.c.l.bf16 %v1159_v40 }
 0x44c   : > { %v991_v50 = vadd.f32 %v990_v48, %v989_v49 }
 0x44e   : > { %v993_v51 = vpack.c.bf16 %v991_v50, %v991_v50  ;;  %992 = vst.msk [vmem:[#allocation2] sm:$0x3] %vm297_vm0, %v991_v50 }
 0x450   : > { %995 = vst.msk [vmem:[%s994_s21] sm:$0x1] %vm517_vm3, %v993_v51  ;;  %s1475_s21 = scalar_lea.vmem %s2582_s0, %s1474_s19 [#allocation3]  ;;  %s1865_s0 = sshll.u32 %s2429_s15, 7 }
 0x451   : > { %s2888_s29 = scalar_lea.hbm %s2943_s3, %s1865_s0  ;;  %s2353_s15 = scalar_lea.vmem %s2890_s7, 128 }
 0x452   : > { %p2354_p2 = scmp.ne.s32.totalorder %s2890_s7, %s2353_s15 }
 0x454   : > { %p2355_p4 = pnand %p2354_p2, %p2521_p9 }
 0x455   : > { %v1005_v52 = vld [vmem:[#allocation2] sm:$0x3] }
 0x456   : > { %v1006_v53 = vpack.c.bf16 %v1005_v52, %v1005_v52  ;;  %p2356_p5 = pneg %p2355_p4 }
 0x458   : > { %2039 = vmatmul.mubr.msk.bf16.vlgmr.msra.gmra.mxu0 %vm338_vm2, %v1006_v53  ;;  %2047 = vmatmul.mubr.msk.bf16.vlgmr.msra.gmra.mxu1 %vm338_vm2, %v1006_v53 }
 0x459   : > { %2051 = vmatpush3.bf16.msra.mxu0 %v2619_v7  ;;  %2054 = vmatprep.mubr.msk.bf16.mxu0 %vm2446_vm1, %v2445_v0 }
 0x45a   : > { %2052 = vmatprep.subr.bf16.mxu0 %v2445_v0  ;;  %2059 = vmatpush3.bf16.msra.mxu1 %v2602_v1 }
 0x45b   : > { %2060 = vmatprep.subr.bf16.mxu1 %v2445_v0  ;;  %2062 = vmatprep.mubr.msk.bf16.mxu1 %vm2446_vm1, %v2445_v0 }
 0x45d   : > { %2053 = vmatpush3.bf16.msra.mxu0 %v2625_v8 }
 0x45e   : > { %2066 = vmatprep.subr.bf16.mxu0 %v2445_v0  ;;  %2061 = vmatpush3.bf16.msra.mxu1 %v2604_v2 }
 0x45f   : > { %2074 = vmatprep.subr.bf16.mxu1 %v2445_v0 }
 0x460   : > { %2055 = vmatmul.mubr.msk.bf16.vlgmr.msra.gmra.mxu0 %vm338_vm2, %v1006_v53 }
 0x461   : > { %2067 = vmatpush3.bf16.msra.mxu0 %v2610_v4  ;;  %2070 = vmatprep.mubr.msk.bf16.mxu0 %vm2446_vm1, %v2445_v0 }
 0x462   : > { %2068 = vmatprep.subr.bf16.mxu0 %v2445_v0 }
 0x465   : > { %2069 = vmatpush3.bf16.msra.mxu0 %v2615_v6 }
 0x466   : > { %2082 = vmatprep.subr.bf16.mxu0 %v2445_v0 }
 0x518   : > { %v1044_v56 = vpop.f32.mrf.mxu0  ;;  %v1084_v58 = vpop.f32.mrf.mxu1 }
 0x519   : > { %v1090_v59 = vadd.f32 %v1044_v56, %v1002_v55  ;;  %v1097_v11 = vadd.f32 %v1084_v58, %v1003_v63 }
 0x51a   : > { %v2040_v60 = vpop.f32.mrf.mxu0  ;;  %v2048_v61 = vpop.f32.mrf.mxu1 }
 0x51b   : > { %v1842_v62 = vmul.f32 -1.442695, %v1090_v59  ;;  %v1843_v14 = vmul.f32 -1.442695, %v1097_v11  ;;  %v1160_v60 = vld [vmem:[%s1157_s4 + $0x2] sm:$0x1] }
 0x51c   : > { %v1047_v3 = vpop.f32.mrf.mxu0  ;;  %v1087_v5 = vpop.f32.mrf.mxu1  ;;  %s2357_s4 = sshll.u32 %s2447_s10, 4  ;;  %s2358_s4 = int_to_ptr.vmem [resolvable:$false] %s2357_s4 }
 0x51d   : > { %2257 = vpow2.f32 %v1842_v62  ;;  %v1163_v62 = vunpack.c.l.bf16 %v1160_v60  ;;  %p2360_p6 = scmp.lt.s32.totalorder %s2890_s7, %s2358_s4 }
 0x51e   : > { %v2041_v9 = vpop.f32.mrf.mxu0  ;;  %v2049_v10 = vpop.f32.mrf.mxu1  ;;  %2259 = vpow2.f32 %v1843_v14 }
 0x520   : > { %v1138_v12 = vpop.f32.mrf.mxu0 }
 0x521   : > { %v1139_v23 = vadd.f32 %v2663_v32, %v1138_v12 }
 0x522   : > { %v2056_v13 = vpop.f32.mrf.mxu0 }
 0x524   : > { %v1141_v15 = vpop.f32.mrf.mxu0 }
 0x526   : > { %v2057_v16 = vpop.f32.mrf.mxu0 }
 0x52a   : > { %v2258_v17 = vpop.eup %2257 }
 0x52b   : > { %v1094_v18 = vadd.f32 1.0, %v2258_v17  ;;  %v2260_v19 = vpop.eup %2259 }
 0x52c   : > { %v1101_v21 = vadd.f32 1.0, %v2260_v19 }
 0x52d   : > { %2261 = vrcp.f32 %v1094_v18 }
 0x52e   : > { %2263 = vrcp.f32 %v1101_v21 }
 0x53a   : > { %v2262_v24 = vpop.eup %2261 }
 0x53b   : > { %v1144_v25 = vmul.f32 %v2262_v24, %v1139_v23  ;;  %v2264_v27 = vpop.eup %2263 }
 0x53c   : > { %v1147_v28 = vsub.f32 1.0, %v2264_v27  ;;  %v1149_v30 = vmul.f32 %v2264_v27, %v1005_v52 }
 0x53d   : > { %v1145_v26 = vadd.f32 %v1144_v25, %v1004_v22  ;;  %v1321_v25 = vunpack.c.l.bf16 %v1318_v20 }
 0x53f   : > { %2265 = vtanh.f32 %v1145_v26 }
 0x54c   : > { %v2266_v29 = vpop.eup %2265 }
 0x54d   : > { %v1148_v31 = vmul.f32 %v2266_v29, %v1147_v28 }
 0x54f   : > { %v1150_v33 = vadd.f32 %v1149_v30, %v1148_v31 }
 0x551   : > { %v1152_v34 = vpack.c.bf16 %v1150_v33, %v1150_v33  ;;  %1151 = vst.msk [vmem:[#allocation2] sm:$0x3] %vm297_vm0, %v1150_v33 }
 0x553   : > { %1154 = vst.msk [vmem:[%s1153_s23] sm:$0x1] %vm517_vm3, %v1152_v34 }
 0x558   : > { %v1164_v35 = vld [vmem:[#allocation2] sm:$0x3] }
 0x559   : > { %v1165_v36 = vpack.c.bf16 %v1164_v35, %v1164_v35 }
 0x55b   : > { %2063 = vmatmul.mubr.msk.bf16.vlgmr.msra.gmra.mxu1 %vm338_vm2, %v1165_v36  ;;  %2071 = vmatmul.mubr.msk.bf16.vlgmr.msra.gmra.mxu0 %vm338_vm2, %v1165_v36 }
 0x55c   : > { %2075 = vmatpush3.bf16.msra.mxu1 %v2619_v7  ;;  %2078 = vmatprep.mubr.msk.bf16.mxu1 %vm2446_vm1, %v2445_v0 }
 0x55d   : > { %2076 = vmatprep.subr.bf16.mxu1 %v2445_v0  ;;  %2083 = vmatpush3.bf16.msra.mxu0 %v2602_v1 }
 0x55e   : > { %2084 = vmatprep.subr.bf16.mxu0 %v2445_v0  ;;  %2086 = vmatprep.mubr.msk.bf16.mxu0 %vm2446_vm1, %v2445_v0 }
 0x560   : > { %2077 = vmatpush3.bf16.msra.mxu1 %v2625_v8 }
 0x561   : > { %2090 = vmatprep.subr.bf16.mxu1 %v2445_v0  ;;  %2085 = vmatpush3.bf16.msra.mxu0 %v2604_v2 }
 0x562   : > { %2098 = vmatprep.subr.bf16.mxu0 %v2445_v0 }
 0x563   : > { %2079 = vmatmul.mubr.msk.bf16.vlgmr.msra.gmra.mxu1 %vm338_vm2, %v1165_v36 }
 0x564   : > { %2091 = vmatpush3.bf16.msra.mxu1 %v2610_v4  ;;  %2094 = vmatprep.mubr.msk.bf16.mxu1 %vm2446_vm1, %v2445_v0 }
 0x565   : > { %2092 = vmatprep.subr.bf16.mxu1 %v2445_v0 }
 0x568   : > { %2093 = vmatpush3.bf16.msra.mxu1 %v2615_v6 }
 0x569   : > { %2106 = vmatprep.subr.bf16.mxu1 %v2445_v0 }
 0x61b   : > { %v1203_v39 = vpop.f32.mrf.mxu1  ;;  %v1243_v41 = vpop.f32.mrf.mxu0 }
 0x61c   : > { %v1249_v42 = vadd.f32 %v1203_v39, %v1161_v38  ;;  %v1256_v51 = vadd.f32 %v1243_v41, %v1162_v46  ;;  %v1319_v39 = vld [vmem:[%s1316_s8 + $0x2] sm:$0x1] }
 0x61d   : > { %v2064_v43 = vpop.f32.mrf.mxu1  ;;  %v2072_v44 = vpop.f32.mrf.mxu0  ;;  %v1322_v41 = vunpack.c.l.bf16 %v1319_v39 }
 0x61e   : > { %v1847_v45 = vmul.f32 -1.442695, %v1249_v42  ;;  %v1848_v54 = vmul.f32 -1.442695, %v1256_v51 }
 0x61f   : > { %v1206_v47 = vpop.f32.mrf.mxu1  ;;  %v1246_v48 = vpop.f32.mrf.mxu0 }
 0x620   : > { %2267 = vpow2.f32 %v1847_v45 }
 0x621   : > { %v2065_v49 = vpop.f32.mrf.mxu1  ;;  %v2073_v50 = vpop.f32.mrf.mxu0  ;;  %2269 = vpow2.f32 %v1848_v54 }
 0x623   : > { %v1297_v52 = vpop.f32.mrf.mxu1 }
 0x624   : > { %v1298_v63 = vadd.f32 %v2663_v32, %v1297_v52 }
 0x625   : > { %v2080_v53 = vpop.f32.mrf.mxu1 }
 0x627   : > { %v1300_v55 = vpop.f32.mrf.mxu1 }
 0x628   : > { %v1476_v55 = vld [vmem:[%s1475_s21] sm:$0x1] }
 0x629   : > { %v2081_v56 = vpop.f32.mrf.mxu1 }
 0x62a   : > { %v1479_v56 = vunpack.c.l.bf16 %v1476_v55 }
 0x62d   : > { %v2268_v57 = vpop.eup %2267 }
 0x62e   : > { %v1253_v58 = vadd.f32 1.0, %v2268_v57  ;;  %v2270_v59 = vpop.eup %2269 }
 0x62f   : > { %v1260_v61 = vadd.f32 1.0, %v2270_v59 }
 0x630   : > { %2271 = vrcp.f32 %v1253_v58  ;;  %v1477_v58 = vld [vmem:[%s1475_s21 + $0x1] sm:$0x1] }
 0x631   : > { %2273 = vrcp.f32 %v1260_v61 }
 0x63d   : > { %v2272_v3 = vpop.eup %2271 }
 0x63e   : > { %v1303_v5 = vmul.f32 %v2272_v3, %v1298_v63  ;;  %v2274_v10 = vpop.eup %2273 }
 0x63f   : > { %v1306_v11 = vsub.f32 1.0, %v2274_v10  ;;  %v1308_v13 = vmul.f32 %v2274_v10, %v1164_v35 }
 0x640   : > { %v1304_v9 = vadd.f32 %v1303_v5, %v1163_v62 }
 0x642   : > { %2275 = vtanh.f32 %v1304_v9 }
 0x64f   : > { %v2276_v12 = vpop.eup %2275 }
 0x650   : > { %v1307_v14 = vmul.f32 %v2276_v12, %v1306_v11 }
 0x652   : > { %v1309_v15 = vadd.f32 %v1308_v13, %v1307_v14 }
 0x654   : > { %v1311_v16 = vpack.c.bf16 %v1309_v15, %v1309_v15  ;;  %1310 = vst.msk [vmem:[#allocation2] sm:$0x3] %vm297_vm0, %v1309_v15 }
 0x656   : > { %1313 = vst.msk [vmem:[%s1312_s30] sm:$0x1] %vm517_vm3, %v1311_v16  ;;  %s2359_s30 = scalar_lea.vmem %s2358_s4, 256 }
 0x657   : > { %p2361_p7 = scmp.lt.s32.totalorder %s2359_s30, %s2353_s15 }
 0x659   : > { %p2362_p1 = por %p2361_p7, %p2360_p6 }
 0x65b   : > { %v1323_v17 = vld [vmem:[#allocation2] sm:$0x3]  ;;  %p2363_p10 = pnand %p2362_p1, %p2356_p5 }
 0x65c   : > { %v1324_v18 = vpack.c.bf16 %v1323_v17, %v1323_v17 }
 0x65e   : > { %2087 = vmatmul.mubr.msk.bf16.vlgmr.msra.gmra.mxu0 %vm338_vm2, %v1324_v18  ;;  %2095 = vmatmul.mubr.msk.bf16.vlgmr.msra.gmra.mxu1 %vm338_vm2, %v1324_v18 }
 0x65f   : > { %2099 = vmatpush3.bf16.msra.mxu0 %v2619_v7  ;;  %2102 = vmatprep.mubr.msk.bf16.mxu0 %vm2446_vm1, %v2445_v0 }
 0x660   : > { %2100 = vmatprep.subr.bf16.mxu0 %v2445_v0  ;;  %2107 = vmatpush3.bf16.msra.mxu1 %v2602_v1  ;;  %v1317_v1 = vld [vmem:[%s1316_s8] sm:$0x1] }
 0x661   : > { %2108 = vmatprep.subr.bf16.mxu1 %v2445_v0  ;;  %2110 = vmatprep.mubr.msk.bf16.mxu1 %vm2446_vm1, %v2445_v0 }
 0x663   : > { %2101 = vmatpush3.bf16.msra.mxu0 %v2625_v8 }
 0x664   : > { %2114 = vmatprep.subr.bf16.mxu0 %v2445_v0  ;;  %2109 = vmatpush3.bf16.msra.mxu1 %v2604_v2  ;;  %v1320_v2 = vunpack.c.l.bf16 %v1317_v1 }
 0x665   : > { %2122 = vmatprep.subr.bf16.mxu1 %v2445_v0 }
 0x666   : > { %2103 = vmatmul.mubr.msk.bf16.vlgmr.msra.gmra.mxu0 %vm338_vm2, %v1324_v18  ;;  %v1478_v18 = vld [vmem:[%s1475_s21 + $0x2] sm:$0x1] }
 0x667   : > { %2115 = vmatpush3.bf16.msra.mxu0 %v2610_v4  ;;  %2118 = vmatprep.mubr.msk.bf16.mxu0 %vm2446_vm1, %v2445_v0 }
 0x668   : > { %2116 = vmatprep.subr.bf16.mxu0 %v2445_v0 }
 0x66b   : > { %2117 = vmatpush3.bf16.msra.mxu0 %v2615_v6 }
 0x71e   : > { %v1362_v19 = vpop.f32.mrf.mxu0  ;;  %v1402_v21 = vpop.f32.mrf.mxu1 }
 0x71f   : > { %v1408_v22 = vadd.f32 %v1362_v19, %v1320_v2  ;;  %v1415_v29 = vadd.f32 %v1402_v21, %v1321_v25  ;;  %v1481_v2 = vunpack.c.l.bf16 %v1478_v18 }
 0x720   : > { %v2088_v4 = vpop.f32.mrf.mxu0  ;;  %v2096_v23 = vpop.f32.mrf.mxu1 }
 0x721   : > { %v1852_v24 = vmul.f32 -1.442695, %v1408_v22  ;;  %v1853_v33 = vmul.f32 -1.442695, %v1415_v29 }
 0x722   : > { %v1365_v26 = vpop.f32.mrf.mxu0  ;;  %v1405_v27 = vpop.f32.mrf.mxu1 }
 0x723   : > { %2277 = vpow2.f32 %v1852_v24 }
 0x724   : > { %v2089_v6 = vpop.f32.mrf.mxu0  ;;  %v2097_v28 = vpop.f32.mrf.mxu1  ;;  %2279 = vpow2.f32 %v1853_v33 }
 0x726   : > { %v1456_v30 = vpop.f32.mrf.mxu0 }
 0x727   : > { %v1457_v42 = vadd.f32 %v2663_v32, %v1456_v30 }
 0x728   : > { %v2104_v31 = vpop.f32.mrf.mxu0 }
 0x72a   : > { %v1459_v34 = vpop.f32.mrf.mxu0 }
 0x72c   : > { %v2105_v35 = vpop.f32.mrf.mxu0 }
 0x730   : > { %v2278_v36 = vpop.eup %2277 }
 0x731   : > { %v1412_v37 = vadd.f32 1.0, %v2278_v36  ;;  %v2280_v38 = vpop.eup %2279 }
 0x732   : > { %v1419_v40 = vadd.f32 1.0, %v2280_v38 }
 0x733   : > { %2281 = vrcp.f32 %v1412_v37 }
 0x734   : > { %2283 = vrcp.f32 %v1419_v40 }
 0x740   : > { %v2282_v43 = vpop.eup %2281 }
 0x741   : > { %v1462_v44 = vmul.f32 %v2282_v43, %v1457_v42  ;;  %v2284_v46 = vpop.eup %2283 }
 0x742   : > { %v1465_v47 = vsub.f32 1.0, %v2284_v46  ;;  %v1467_v49 = vmul.f32 %v2284_v46, %v1323_v17 }
 0x743   : > { %v1463_v45 = vadd.f32 %v1462_v44, %v1322_v41 }
 0x745   : > { %2285 = vtanh.f32 %v1463_v45 }
 0x752   : > { %v2286_v48 = vpop.eup %2285 }
 0x753   : > { %v1466_v50 = vmul.f32 %v2286_v48, %v1465_v47 }
 0x755   : > { %v1468_v51 = vadd.f32 %v1467_v49, %v1466_v50 }
 0x757   : > { %v1470_v52 = vpack.c.bf16 %v1468_v51, %v1468_v51  ;;  %1469 = vst.msk [vmem:[#allocation2] sm:$0x3] %vm297_vm0, %v1468_v51 }
 0x759   : > { %1472 = vst.msk [vmem:[%s1471_s11] sm:$0x1] %vm517_vm3, %v1470_v52 }
 0x75e   : > { %v1482_v53 = vld [vmem:[#allocation2] sm:$0x3] }
 0x75f   : > { %v1483_v54 = vpack.c.bf16 %v1482_v53, %v1482_v53 }
 0x761   : > { %2111 = vmatmul.mubr.msk.bf16.vlgmr.msra.gmra.mxu1 %vm338_vm2, %v1483_v54  ;;  %2119 = vmatmul.mubr.msk.bf16.vlgmr.msra.gmra.mxu0 %vm338_vm2, %v1483_v54 }
 0x762   : > { %2123 = vmatpush3.bf16.msra.mxu1 %v2619_v7  ;;  %2126 = vmatprep.mubr.msk.bf16.mxu1 %vm2446_vm1, %v2445_v0 }
 0x763   : > { %2124 = vmatprep.subr.bf16.mxu1 %v2445_v0  ;;  %v1480_v0 = vunpack.c.l.bf16 %v1477_v58 }
 0x766   : > { %2125 = vmatpush3.bf16.msra.mxu1 %v2625_v8 }
 0x769   : > { %2127 = vmatmul.mubr.msk.bf16.vlgmr.msra.gmra.mxu1 %vm338_vm2, %v1483_v54 }
 0x821   : > { %v1521_v57 = vpop.f32.mrf.mxu1  ;;  %v1561_v7 = vpop.f32.mrf.mxu0 }
 0x822   : > { %v1567_v59 = vadd.f32 %v1521_v57, %v1479_v56  ;;  %v1574_v9 = vadd.f32 %v1561_v7, %v1480_v0 }
 0x823   : > { %v2112_v60 = vpop.f32.mrf.mxu1  ;;  %v2120_v61 = vpop.f32.mrf.mxu0 }
 0x824   : > { %v1857_v62 = vmul.f32 -1.442695, %v1567_v59  ;;  %v1858_v12 = vmul.f32 -1.442695, %v1574_v9 }
 0x825   : > { %v1524_v63 = vpop.f32.mrf.mxu1  ;;  %v1564_v8 = vpop.f32.mrf.mxu0 }
 0x826   : > { %2287 = vpow2.f32 %v1857_v62 }
 0x827   : > { %v2113_v3 = vpop.f32.mrf.mxu1  ;;  %v2121_v5 = vpop.f32.mrf.mxu0  ;;  %2289 = vpow2.f32 %v1858_v12 }
 0x829   : > { %v1615_v10 = vpop.f32.mrf.mxu1 }
 0x82a   : > { %v1616_v19 = vadd.f32 %v2663_v32, %v1615_v10 }
 0x82b   : > { %v2128_v11 = vpop.f32.mrf.mxu1 }
 0x82d   : > { %v1618_v13 = vpop.f32.mrf.mxu1 }
 0x82f   : > { %v2129_v14 = vpop.f32.mrf.mxu1 }
 0x833   : > { %v2288_v15 = vpop.eup %2287 }
 0x834   : > { %v1571_v16 = vadd.f32 1.0, %v2288_v15  ;;  %v2290_v17 = vpop.eup %2289 }
 0x835   : > { %v1578_v1 = vadd.f32 1.0, %v2290_v17 }
 0x836   : > { %2291 = vrcp.f32 %v1571_v16 }
 0x837   : > { %2293 = vrcp.f32 %v1578_v1 }
 0x843   : > { %v2292_v20 = vpop.eup %2291 }
 0x844   : > { %v1621_v21 = vmul.f32 %v2292_v20, %v1616_v19  ;;  %v2294_v4 = vpop.eup %2293 }
 0x845   : > { %v1624_v23 = vsub.f32 1.0, %v2294_v4  ;;  %v1626_v25 = vmul.f32 %v2294_v4, %v1482_v53 }
 0x846   : > { %v1622_v22 = vadd.f32 %v1621_v21, %v1481_v2 }
 0x848   : > { %2295 = vtanh.f32 %v1622_v22 }
 0x855   : > { %v2296_v24 = vpop.eup %2295 }
 0x856   : > { %v1625_v26 = vmul.f32 %v2296_v24, %v1624_v23 }
 0x858   : > { %v1627_v27 = vadd.f32 %v1626_v25, %v1625_v26 }
 0x85a   : > { %1628 = vst.msk [vmem:[#allocation2] sm:$0x3] %vm297_vm0, %v1627_v27  ;;  %v1629_v32 = vpack.c.bf16 %v1627_v27, %v1627_v27 }
 0x85c   : > { %1631 = vst.msk [vmem:[%s1630_s9] sm:$0x1] %vm517_vm3, %v1629_v32 }
 0x85d   : > { %2366 = shalt.err (!%p2363_p10)
}
 0x85e   : > { %s2367_s6 = scalar_lea.hbm %s2888_s29, 128  ;;  %s2371_s11 = scalar_lea.hbm %s2943_s3, 256 }
 0x85f   : > { %p2368_p13 = scmp.ne.s32.totalorder %s2888_s29, %s2367_s6  ;;  %p2372_p0 = scmp.lt.s32.totalorder %s2888_s29, %s2943_s3 }
 0x860   : > { %p2373_p2 = scmp.lt.s32.totalorder %s2371_s11, %s2367_s6 }
 0x861   : > { %p2369_p3 = pnand %p2368_p13, %p2521_p9 }
 0x862   : > { %p2374_p4 = por %p2373_p2, %p2372_p0 }
 0x863   : > { %p2370_p8 = pneg %p2369_p3 }
 0x865   : > { %p2375_p5 = pnand %p2374_p4, %p2370_p8 }
 0x867   : > { %2378 = shalt.err (!%p2375_p5)
}
 0x868   : > { %s2448_s21 = smov 16   ;;  %s2449_s0 = smov 1  }
 0x869   : > { %2140 = dma.vmem_to_hbm [thread:$0]  (%p2521_p9), %s2890_s7, 128, %s2888_s29, %s1633_s5, %s2448_s21, %s2448_s21, %s2449_s0  }
 0x86a PF: > { %s1667_s9 = sand.u32 1, %s2417_s12   ;;  %p2150_p6 = pnand %p1800_p12, %p2528_p11 }
 0x86b   : > { %s1668_s22 = scalar_lea.sflag [#allocation5], %s1667_s9 }
 0x86c   : > { %p2151_p7 = pneg %p2150_p6 }
 0x86e   : > { %2412 = dma.done.wait (%p2151_p7), %s1668_s22, 128  }
 0x86f   : > { %2414 = vsyncadd (%p2151_p7), %s1668_s22, 4294967168  ;;  %s22_s17 = sadd.s32 1, %s2437_s17   ;;  %s2952_s12 = smov %s2421_s13 }
 0x870   : > { %p19_p1 = scmp.ge.s32.totalorder %s22_s17, 4   ;;  %s2953_s13 = smov %s2425_s14 }
 0x871   : > { %s2954_s14 = smov %s2526_s26  ;;  %s2955_s15 = smov %s2433_s16 }
 0x872   : > { %s2956_s16 = smov %s2958_s20  ;;  %21 = sbr.rel (!%p19_p1) target bundleno = 10 (0xa), region = 115 }
 0x877   :  { %1673 = vsyncpa [#allocation4], 1 }
 0x878   :  { %1675 = vsyncpa [#allocation4 + $0x1], 1 }
 0x879   :  { %1676 = vsyncpa [#allocation7], 1 }
 0x87a   :  { %1678 = vsyncpa [#allocation7 + $0x1], 1 }
 0x87b   :  { %1679 = vsyncpa [#allocation5], 1 }
 0x87c   :  { %1681 = vsyncpa [#allocation5 + $0x1], 1 }

</bundles_post_ra>
